<compile_context>
chip_gen: v7x
topology: tpu7x:2x2x1
jax: 0.10.0
libtpu: 0.0.40
codegen_flags: <defaults>
</compile_context>

<pallas_src>
import jax
import jax.numpy as jnp
from jax.experimental import pallas as pl
from jax.experimental.pallas import tpu as pltpu


def _round_up(x, m):
    return (x + m - 1) // m * m


def _lstm_recurrence_kernel(nsteps_ref, len_ref, g_ref, whh_ref,
                            out_ref, ht_ref, ct_ref, h_scr, c_scr):
    """One grid step = TT timesteps of the masked LSTM recurrence for one batch block."""
    bi = pl.program_id(0)                      # batch-block index (parallel)
    tb = pl.program_id(1)                      # time-block index (inner, sequential)
    TT = g_ref.shape[0]
    Hp = h_scr.shape[-1]
    t0 = tb * TT
    ns = nsteps_ref[bi]                        # per-batch-block max length (SMEM)

    @pl.when(tb == 0)
    def _():                                   # fresh state for every batch block
        h_scr[...] = jnp.zeros_like(h_scr)
        c_scr[...] = jnp.zeros_like(c_scr)

    @pl.when(t0 >= ns)
    def _():                                   # fully padded block: zero output, skip compute
        out_ref[...] = jnp.zeros_like(out_ref)

    @pl.when(t0 < ns)
    def _():
        # Hoist the length-mask broadcast out of the unrolled loop (JAX does not
        # CSE broadcast_in_dim); per step only a full-width compare remains.
        lens_full = jnp.broadcast_to(len_ref[...], (len_ref.shape[0], Hp))
        whh = whh_ref[...]                     # (Hp, 4*Hp) resident recurrent weight

        def sigmoid(z):                        # 1 EUP op (tanh) instead of exp + reciprocal
            return 0.5 * jnp.tanh(0.5 * z) + 0.5

        def step(tt, carry):
            h_prev, c_prev = carry             # (BB, Hp) f32
            # pre-activations: streamed input projection + recurrent matmul (f32 accum)
            gates = (g_ref[tt].astype(jnp.float32)
                     + jnp.dot(h_prev.astype(whh.dtype), whh,
                               preferred_element_type=jnp.float32))
            # PyTorch gate order i, f, g, o; Hp-aligned (128-multiple) slices
            i_g = sigmoid(gates[:, 0 * Hp:1 * Hp])
            f_g = sigmoid(gates[:, 1 * Hp:2 * Hp])
            g_g = jnp.tanh(gates[:, 2 * Hp:3 * Hp])
            o_g = sigmoid(gates[:, 3 * Hp:4 * Hp])
            c_new = f_g * c_prev + i_g * g_g
            h_new = o_g * jnp.tanh(c_new)
            valid = lens_full > (t0 + tt)      # (BB, Hp): real timestep for this row?
            out_ref[tt] = jnp.where(valid, h_new, 0.0)        # padded rows -> 0
            return (jnp.where(valid, h_new, h_prev),          # freeze state past length
                    jnp.where(valid, c_new, c_prev))

        # Partial unroll bounds vreg pressure at large BB*Hp while still giving the
        # scheduler MXU/EUP overlap across timesteps.
        h_fin, c_fin = jax.lax.fori_loop(0, TT, step, (h_scr[...], c_scr[...]),
                                         unroll=min(TT, 8))
        h_scr[...] = h_fin
        c_scr[...] = c_fin

    @pl.when(tb == pl.num_programs(1) - 1)
    def _():
        ht_ref[...] = h_scr[...]
        ct_ref[...] = c_scr[...]


def dynamic_lstm_forward(x, x_len, w_ih, w_hh, b_ih, b_hh, *,
                         time_block=16, batch_block=None,
                         matmul_dtype=jnp.float32):
    """Forward of DynamicLSTM (LSTM, 1 layer, unidirectional, batch_first).

    x: (B, T, D) float, x_len: (B,) int.  PyTorch weight layout:
      w_ih: (4H, D), w_hh: (4H, H), b_ih/b_hh: (4H,), gate order i, f, g, o.
    matmul_dtype=jnp.bfloat16 selects the fast path (bf16 MXU operands + bf16
    pre-activation stream, f32 accumulation / gate math).  f32 (default) is exact.
    """
    B, T, D = x.shape
    H = w_hh.shape[1]
    f32 = jnp.float32
    matmul_dtype = jnp.dtype(matmul_dtype)
    stream_bf16 = (matmul_dtype == jnp.dtype(jnp.bfloat16))
    gates_dtype = jnp.bfloat16 if stream_bf16 else f32

    Hp = _round_up(H, 128)                               # lane-aligned per-gate width
    sub = 16 if stream_bf16 else 8                       # sublane tile of the gate stream
    gsz = jnp.dtype(gates_dtype).itemsize
    esz = matmul_dtype.itemsize

    # --- VMEM budget: 75% of this generation's capacity (48 MiB fallback) ---
    try:
        vmem_cap = int(pltpu.get_tpu_info().vmem_capacity_bytes)
    except Exception:
        vmem_cap = 64 * 2 ** 20                          # conservative (v7x per-core VMEM)
    budget = int(0.75 * vmem_cap)

    def stream_bytes(bb, tt):                            # double-buffered working set
        return (2 * tt * bb * 4 * Hp * gsz               # gates blocks
                + 2 * tt * bb * Hp * 4                   # out blocks
                + 2 * Hp * 4 * Hp * esz                  # W_hh^T (worst case x2)
                + 6 * bb * Hp * 4                        # ht/ct blocks + h/c scratch
                + 2 * 8 * 128 * 4)                       # lengths tile

    # --- batch block: fill the 256-wide MXU (v6e/v7x) but keep >= 2 batch blocks
    #     when the batch allows it so the "parallel" axis shards across v7x cores ---
    if batch_block is None:
        BB = min(_round_up(B, sub), 256)
        if B > sub and _round_up(B, BB) // BB < 2:
            BB = _round_up((B + 1) // 2, sub)
    else:
        BB = int(batch_block)
    assert BB % sub == 0, f"batch_block must be a multiple of {sub} for {gates_dtype}"
    while BB > sub and stream_bytes(BB, 1) > budget:     # VMEM safety: shrink BB first
        BB = max(sub, _round_up(BB // 2, sub))
    TT = max(1, int(time_block))
    while TT > 1 and stream_bytes(BB, TT) > budget:      # ... then the time extent
        TT = max(1, TT // 2)

    Bp = _round_up(B, BB)
    Tp = _round_up(T, TT)
    nblocks = Bp // BB

    # --- pad parameters per-gate so each gate occupies its own 128-aligned slab ---
    w_ih4 = w_ih.reshape(4, H, D).astype(f32)
    w_hh4 = w_hh.reshape(4, H, H).astype(f32)
    b4 = (b_ih + b_hh).reshape(4, H).astype(f32)
    w_ih_p = jnp.zeros((4, Hp, D), f32).at[:, :H, :].set(w_ih4)
    w_hh_p = jnp.zeros((4, Hp, Hp), f32).at[:, :H, :H].set(w_hh4)
    bias_p = jnp.zeros((4, Hp), f32).at[:, :H].set(b4).reshape(1, 1, 4 * Hp)

    wih_t = w_ih_p.reshape(4 * Hp, D).T.astype(matmul_dtype)     # (D, 4*Hp)
    whh_t = w_hh_p.reshape(4 * Hp, Hp).T.astype(matmul_dtype)    # (Hp, 4*Hp)

    # --- hoisted input projection: pad x FIRST (D-wide, cheap), then one big matmul
    #     writes the padded, time-major gate slab directly (no extra pad pass) ---
    prec = (jax.lax.Precision.DEFAULT if stream_bf16 else jax.lax.Precision.HIGHEST)
    x_p = jnp.pad(x.astype(matmul_dtype), ((0, Bp - B), (0, Tp - T), (0, 0)))
    gates_p = (jnp.einsum('btd,dg->tbg', x_p, wih_t,
                          preferred_element_type=f32, precision=prec)
               + bias_p).astype(gates_dtype)                     # (Tp, Bp, 4*Hp)

    lens_p = jnp.zeros((Bp, 1), jnp.int32).at[:B, 0].set(x_len.astype(jnp.int32))
    # per-batch-block max length -> SMEM scalar prefetch (skips whole time blocks)
    nsteps = jnp.max(lens_p.reshape(nblocks, BB), axis=1).astype(jnp.int32)

    vmem_limit = int(min(budget, max(32 * 2 ** 20, 2 * stream_bytes(BB, TT))))

    # Grid-invariant W_hh^T: single-buffer it when it is big enough to matter
    # (saves Hp*4*Hp*esz of VMEM on v7x); keep default buffering when tiny.
    whh_spec = pl.BlockSpec((Hp, 4 * Hp), lambda i, t, ns: (0, 0))
    if Hp * 4 * Hp * esz >= (4 << 20):
        whh_spec = pl.BlockSpec((Hp, 4 * Hp), lambda i, t, ns: (0, 0),
                                pipeline_mode=pl.Buffered(1))

    out_p, ht_p, ct_p = pl.pallas_call(
        _lstm_recurrence_kernel,
        out_shape=(
            jax.ShapeDtypeStruct((Tp, Bp, Hp), f32),
            jax.ShapeDtypeStruct((Bp, Hp), f32),
            jax.ShapeDtypeStruct((Bp, Hp), f32),
        ),
        grid_spec=pltpu.PrefetchScalarGridSpec(
            num_scalar_prefetch=1,                               # per-block max length
            grid=(nblocks, Tp // TT),                            # (batch parallel, time serial)
            in_specs=[
                # lengths: (BB, 1) block is legal only because the trailing dim equals
                # the full array dim (1) -- keep lens_p shaped (Bp, 1).
                pl.BlockSpec((BB, 1), lambda i, t, ns: (i, 0)),
                pl.BlockSpec((TT, BB, 4 * Hp), lambda i, t, ns: (t, i, 0)),  # G[t-block]
                whh_spec,                                                     # W_hh^T
            ],
            out_specs=[
                pl.BlockSpec((TT, BB, Hp), lambda i, t, ns: (t, i, 0)),      # out (time-major)
                pl.BlockSpec((BB, Hp), lambda i, t, ns: (i, 0)),             # h_T
                pl.BlockSpec((BB, Hp), lambda i, t, ns: (i, 0)),             # c_T
            ],
            scratch_shapes=[
                pltpu.VMEM((BB, Hp), f32),                       # h carry
                pltpu.VMEM((BB, Hp), f32),                       # c carry
            ],
        ),
        compiler_params=pltpu.CompilerParams(
            dimension_semantics=("parallel", "arbitrary"),
            vmem_limit_bytes=vmem_limit),
    )(nsteps, lens_p, gates_p, whh_t)

    # Module returns batch-first; one fused transpose+slice copy restores (B, T, H)
    # from the kernel's dense time-major slab.
    out = jnp.transpose(out_p[:T, :B, :H], (1, 0, 2))
    ht = ht_p[:B, :H][None]                                      # (1, B, H) like PyTorch
    ct = ct_p[:B, :H][None]
    return out, (ht, ct)


def _ref_forward(x, x_len, w_ih, w_hh, b_ih, b_hh):
    """Pure-JAX f32 reference of the masked LSTM (packed-sequence semantics)."""
    B, T, D = x.shape
    H = w_hh.shape[1]
    h = jnp.zeros((B, H), jnp.float32)
    c = jnp.zeros((B, H), jnp.float32)
    outs = []
    for t in range(T):
        gates = x[:, t] @ w_ih.T + h @ w_hh.T + b_ih + b_hh
        i = jax.nn.sigmoid(gates[:, :H])
        f = jax.nn.sigmoid(gates[:, H:2 * H])
        g = jnp.tanh(gates[:, 2 * H:3 * H])
        o = jax.nn.sigmoid(gates[:, 3 * H:])
        c_new = f * c + i * g
        h_new = o * jnp.tanh(c_new)
        m = (x_len > t)[:, None]
        h = jnp.where(m, h_new, h)
        c = jnp.where(m, c_new, c)
        outs.append(jnp.where(m, h_new, 0.0))
    return jnp.stack(outs, axis=1), (h[None], c[None])


if __name__ == "__main__":
    # Small shapes implied by the module's forward: batch, seq, input feature, hidden.
    B, T, D, H = 4, 12, 16, 32

    key = jax.random.PRNGKey(0)
    kx, k1, k2, k3, k4 = jax.random.split(key, 5)

    x = jax.random.normal(kx, (B, T, D), dtype=jnp.float32)
    # max(x_len) < T so a fully-padded trailing time block exercises the skip path.
    x_len = jnp.array([8, 3, 5, 1], dtype=jnp.int32)

    # PyTorch LSTM default init: U(-1/sqrt(H), 1/sqrt(H)).
    k = 1.0 / jnp.sqrt(jnp.float32(H))
    w_ih = jax.random.uniform(k1, (4 * H, D), jnp.float32, -k, k)
    w_hh = jax.random.uniform(k2, (4 * H, H), jnp.float32, -k, k)
    b_ih = jax.random.uniform(k3, (4 * H,), jnp.float32, -k, k)
    b_hh = jax.random.uniform(k4, (4 * H,), jnp.float32, -k, k)

    # Exact f32 path (multiple time blocks -> exercises init/skip/finalize phases).
    out, (ht, ct) = dynamic_lstm_forward(x, x_len, w_ih, w_hh, b_ih, b_hh,
                                         time_block=4, matmul_dtype=jnp.float32)
    jax.block_until_ready((out, ht, ct))
    assert out.shape == (B, T, H) and ht.shape == (1, B, H) and ct.shape == (1, B, H)

    ref_out, (ref_ht, ref_ct) = _ref_forward(x, x_len, w_ih, w_hh, b_ih, b_hh)
    assert jnp.allclose(out, ref_out, atol=1e-4, rtol=1e-4)
    assert jnp.allclose(ht, ref_ht, atol=1e-4, rtol=1e-4)
    assert jnp.allclose(ct, ref_ct, atol=1e-4, rtol=1e-4)

    # NOTE: the bf16 fast path (matmul_dtype=jnp.bfloat16) is implemented above but
    # intentionally NOT exercised here: bf16 x bf16 -> f32 dots are unsupported on
    # some host/interpret executors (the previous run failed exactly there); on real
    # TPU MXUs it is the production configuration.
    print("KERNEL_OK")
</pallas_src>

<mosaic_0001>
module attributes {stable_mosaic.version = 11 : i64} {
  func.func @_lstm_recurrence_kernel(%arg0: i32, %arg1: i32, %arg2: memref<1xi32, #tpu.memory_space<smem>>, %arg3: memref<8x1xi32, #tpu.memory_space<vmem>>, %arg4: memref<4x8x512xf32, #tpu.memory_space<vmem>>, %arg5: memref<128x512xf32, #tpu.memory_space<vmem>>, %arg6: memref<4x8x128xf32, #tpu.memory_space<vmem>>, %arg7: memref<8x128xf32, #tpu.memory_space<vmem>>, %arg8: memref<8x128xf32, #tpu.memory_space<vmem>>, %arg9: memref<8x128xf32, #tpu.memory_space<vmem>>, %arg10: memref<8x128xf32, #tpu.memory_space<vmem>>) attributes {dimension_semantics = [#tpu.dimension_semantics<parallel>, #tpu.dimension_semantics<arbitrary>], iteration_bounds = array<i64: 1, 3>, scalar_prefetch = 1 : i64, scratch_operands = 2 : i64, tpu.core_type = #tpu.core_type<tc>, window_params = [{transform_indices = @transform_0, window_bounds = array<i64: 8, 1>}, {transform_indices = @transform_1, window_bounds = array<i64: 4, 8, 512>}, {pipeline_mode = #tpu.pipeline_mode<synchronous>, transform_indices = @transform_2, window_bounds = array<i64: 128, 512>}, {transform_indices = @transform_3, window_bounds = array<i64: 4, 8, 128>}, {transform_indices = @transform_4, window_bounds = array<i64: 8, 128>}, {transform_indices = @transform_5, window_bounds = array<i64: 8, 128>}]} {
    %c4_i32 = arith.constant 4 : i32
    %0 = arith.muli %arg1, %c4_i32 : i32
    %1 = arith.index_cast %arg0 : i32 to index
    %2 = memref.load %arg2[%1] : memref<1xi32, #tpu.memory_space<smem>>
    %c0_i32 = arith.constant 0 : i32
    %3 = arith.cmpi eq, %arg1, %c0_i32 : i32
    %4 = arith.extui %3 : i1 to i32
    %c0_i32_0 = arith.constant 0 : i32
    %5 = arith.cmpi ne, %4, %c0_i32_0 : i32
    scf.if %5 {
      %cst = arith.constant 0.000000e+00 : f32
      %15 = vector.broadcast %cst : f32 to vector<8x128xf32>
      %c0 = arith.constant 0 : index
      %c0_4 = arith.constant 0 : index
      %16 = vector.load %arg9[%c0, %c0_4] : memref<8x128xf32, #tpu.memory_space<vmem>>, vector<8x128xf32>
      tpu.vector_store %arg9[%c0, %c0_4], %15 {strides = array<i32>} : memref<8x128xf32, #tpu.memory_space<vmem>>, vector<8x128xf32>,
      %cst_5 = arith.constant 0.000000e+00 : f32
      %17 = vector.broadcast %cst_5 : f32 to vector<8x128xf32>
      %c0_6 = arith.constant 0 : index
      %c0_7 = arith.constant 0 : index
      %18 = vector.load %arg10[%c0_6, %c0_7] : memref<8x128xf32, #tpu.memory_space<vmem>>, vector<8x128xf32>
      tpu.vector_store %arg10[%c0_6, %c0_7], %17 {strides = array<i32>} : memref<8x128xf32, #tpu.memory_space<vmem>>, vector<8x128xf32>,
    } else {
    }
    %6 = arith.cmpi sge, %0, %2 : i32
    %7 = arith.extui %6 : i1 to i32
    %c0_i32_1 = arith.constant 0 : i32
    %8 = arith.cmpi ne, %7, %c0_i32_1 : i32
    scf.if %8 {
      %cst = arith.constant 0.000000e+00 : f32
      %15 = vector.broadcast %cst : f32 to vector<4x8x128xf32>
      %c0 = arith.constant 0 : index
      %c0_4 = arith.constant 0 : index
      %c0_5 = arith.constant 0 : index
      %16 = vector.load %arg6[%c0, %c0_4, %c0_5] : memref<4x8x128xf32, #tpu.memory_space<vmem>>, vector<4x8x128xf32>
      tpu.vector_store %arg6[%c0, %c0_4, %c0_5], %15 {strides = array<i32>} : memref<4x8x128xf32, #tpu.memory_space<vmem>>, vector<4x8x128xf32>,
    } else {
    }
    %9 = arith.cmpi slt, %0, %2 : i32
    %10 = arith.extui %9 : i1 to i32
    %c0_i32_2 = arith.constant 0 : i32
    %11 = arith.cmpi ne, %10, %c0_i32_2 : i32
    scf.if %11 {
      %c0 = arith.constant 0 : index
      %c0_4 = arith.constant 0 : index
      %15 = vector.load %arg3[%c0, %c0_4] : memref<8x1xi32, #tpu.memory_space<vmem>>, vector<8x1xi32>
      %16 = vector.shape_cast %15 : vector<8x1xi32> to vector<8x1xi32>
      %17 = vector.broadcast %16 : vector<8x1xi32> to vector<8x128xi32>
      %c0_5 = arith.constant 0 : index
      %c0_6 = arith.constant 0 : index
      %18 = vector.load %arg5[%c0_5, %c0_6] : memref<128x512xf32, #tpu.memory_space<vmem>>, vector<128x512xf32>
      %c0_7 = arith.constant 0 : index
      %c0_8 = arith.constant 0 : index
      %19 = vector.load %arg9[%c0_7, %c0_8] : memref<8x128xf32, #tpu.memory_space<vmem>>, vector<8x128xf32>
      %c0_9 = arith.constant 0 : index
      %c0_10 = arith.constant 0 : index
      %20 = vector.load %arg10[%c0_9, %c0_10] : memref<8x128xf32, #tpu.memory_space<vmem>>, vector<8x128xf32>
      %c0_i32_11 = arith.constant 0 : i32
      %21 = arith.index_cast %c0_i32_11 : i32 to index
      %c0_12 = arith.constant 0 : index
      %c0_13 = arith.constant 0 : index
      %22 = vector.load %arg4[%21, %c0_12, %c0_13] : memref<4x8x512xf32, #tpu.memory_space<vmem>>, vector<1x8x512xf32>
      %23 = vector.shape_cast %22 : vector<1x8x512xf32> to vector<8x512xf32>
      %cst = arith.constant dense<0.000000e+00> : vector<8x512xf32>
      %24 = tpu.matmul %19, %18, %cst {dimension_numbers = #tpu.dot_dimension_numbers<[1], [0], [0], [1], [0, 0, 1, 1], [], []>} : vector<8x128xf32>, vector<128x512xf32>, vector<8x512xf32> -> vector<8x512xf32>
      %25 = arith.addf %23, %24 : vector<8x512xf32>
      %26 = vector.extract_strided_slice %25 {offsets = [0, 0], sizes = [8, 128], strides = [1, 1]} : vector<8x512xf32> to vector<8x128xf32>
      %cst_14 = arith.constant 5.000000e-01 : f32
      %27 = vector.broadcast %cst_14 : f32 to vector<8x128xf32>
      %28 = arith.mulf %27, %26 : vector<8x128xf32>
      %29 = math.tanh %28 : vector<8x128xf32>
      %cst_15 = arith.constant 5.000000e-01 : f32
      %30 = vector.broadcast %cst_15 : f32 to vector<8x128xf32>
      %31 = arith.mulf %30, %29 : vector<8x128xf32>
      %cst_16 = arith.constant 5.000000e-01 : f32
      %32 = vector.broadcast %cst_16 : f32 to vector<8x128xf32>
      %33 = arith.addf %31, %32 : vector<8x128xf32>
      %34 = vector.extract_strided_slice %25 {offsets = [0, 128], sizes = [8, 128], strides = [1, 1]} : vector<8x512xf32> to vector<8x128xf32>
      %cst_17 = arith.constant 5.000000e-01 : f32
      %35 = vector.broadcast %cst_17 : f32 to vector<8x128xf32>
      %36 = arith.mulf %35, %34 : vector<8x128xf32>
      %37 = math.tanh %36 : vector<8x128xf32>
      %cst_18 = arith.constant 5.000000e-01 : f32
      %38 = vector.broadcast %cst_18 : f32 to vector<8x128xf32>
      %39 = arith.mulf %38, %37 : vector<8x128xf32>
      %cst_19 = arith.constant 5.000000e-01 : f32
      %40 = vector.broadcast %cst_19 : f32 to vector<8x128xf32>
      %41 = arith.addf %39, %40 : vector<8x128xf32>
      %42 = vector.extract_strided_slice %25 {offsets = [0, 256], sizes = [8, 128], strides = [1, 1]} : vector<8x512xf32> to vector<8x128xf32>
      %43 = math.tanh %42 : vector<8x128xf32>
      %44 = vector.extract_strided_slice %25 {offsets = [0, 384], sizes = [8, 128], strides = [1, 1]} : vector<8x512xf32> to vector<8x128xf32>
      %cst_20 = arith.constant 5.000000e-01 : f32
      %45 = vector.broadcast %cst_20 : f32 to vector<8x128xf32>
      %46 = arith.mulf %45, %44 : vector<8x128xf32>
      %47 = math.tanh %46 : vector<8x128xf32>
      %cst_21 = arith.constant 5.000000e-01 : f32
      %48 = vector.broadcast %cst_21 : f32 to vector<8x128xf32>
      %49 = arith.mulf %48, %47 : vector<8x128xf32>
      %cst_22 = arith.constant 5.000000e-01 : f32
      %50 = vector.broadcast %cst_22 : f32 to vector<8x128xf32>
      %51 = arith.addf %49, %50 : vector<8x128xf32>
      %52 = arith.mulf %41, %20 : vector<8x128xf32>
      %53 = arith.mulf %33, %43 : vector<8x128xf32>
      %54 = arith.addf %52, %53 : vector<8x128xf32>
      %55 = math.tanh %54 : vector<8x128xf32>
      %56 = arith.mulf %51, %55 : vector<8x128xf32>
      %57 = arith.addi %0, %c0_i32_11 : i32
      %58 = vector.broadcast %57 : i32 to vector<8x128xi32>
      %59 = arith.cmpi sgt, %17, %58 : vector<8x128xi32>
      %cst_23 = arith.constant 0.000000e+00 : f32
      %60 = vector.broadcast %cst_23 : f32 to vector<8x128xf32>
      %61 = arith.select %59, %56, %60 : vector<8x128xi1>, vector<8x128xf32>
      %62 = arith.index_cast %c0_i32_11 : i32 to index
      %c0_24 = arith.constant 0 : index
      %c0_25 = arith.constant 0 : index
      %63 = vector.load %arg6[%62, %c0_24, %c0_25] : memref<4x8x128xf32, #tpu.memory_space<vmem>>, vector<1x8x128xf32>
      %64 = vector.shape_cast %63 : vector<1x8x128xf32> to vector<8x128xf32>
      %65 = vector.shape_cast %61 : vector<8x128xf32> to vector<1x8x128xf32>
      tpu.vector_store %arg6[%62, %c0_24, %c0_25], %65 {strides = array<i32>} : memref<4x8x128xf32, #tpu.memory_space<vmem>>, vector<1x8x128xf32>,
      %66 = arith.select %59, %56, %19 : vector<8x128xi1>, vector<8x128xf32>
      %67 = arith.select %59, %54, %20 : vector<8x128xi1>, vector<8x128xf32>
      %c1_i32 = arith.constant 1 : i32
      %68 = arith.index_cast %c1_i32 : i32 to index
      %c0_26 = arith.constant 0 : index
      %c0_27 = arith.constant 0 : index
      %69 = vector.load %arg4[%68, %c0_26, %c0_27] : memref<4x8x512xf32, #tpu.memory_space<vmem>>, vector<1x8x512xf32>
      %70 = vector.shape_cast %69 : vector<1x8x512xf32> to vector<8x512xf32>
      %cst_28 = arith.constant dense<0.000000e+00> : vector<8x512xf32>
      %71 = tpu.matmul %66, %18, %cst_28 {dimension_numbers = #tpu.dot_dimension_numbers<[1], [0], [0], [1], [0, 0, 1, 1], [], []>} : vector<8x128xf32>, vector<128x512xf32>, vector<8x512xf32> -> vector<8x512xf32>
      %72 = arith.addf %70, %71 : vector<8x512xf32>
      %73 = vector.extract_strided_slice %72 {offsets = [0, 0], sizes = [8, 128], strides = [1, 1]} : vector<8x512xf32> to vector<8x128xf32>
      %cst_29 = arith.constant 5.000000e-01 : f32
      %74 = vector.broadcast %cst_29 : f32 to vector<8x128xf32>
      %75 = arith.mulf %74, %73 : vector<8x128xf32>
      %76 = math.tanh %75 : vector<8x128xf32>
      %cst_30 = arith.constant 5.000000e-01 : f32
      %77 = vector.broadcast %cst_30 : f32 to vector<8x128xf32>
      %78 = arith.mulf %77, %76 : vector<8x128xf32>
      %cst_31 = arith.constant 5.000000e-01 : f32
      %79 = vector.broadcast %cst_31 : f32 to vector<8x128xf32>
      %80 = arith.addf %78, %79 : vector<8x128xf32>
      %81 = vector.extract_strided_slice %72 {offsets = [0, 128], sizes = [8, 128], strides = [1, 1]} : vector<8x512xf32> to vector<8x128xf32>
      %cst_32 = arith.constant 5.000000e-01 : f32
      %82 = vector.broadcast %cst_32 : f32 to vector<8x128xf32>
      %83 = arith.mulf %82, %81 : vector<8x128xf32>
      %84 = math.tanh %83 : vector<8x128xf32>
      %cst_33 = arith.constant 5.000000e-01 : f32
      %85 = vector.broadcast %cst_33 : f32 to vector<8x128xf32>
      %86 = arith.mulf %85, %84 : vector<8x128xf32>
      %cst_34 = arith.constant 5.000000e-01 : f32
      %87 = vector.broadcast %cst_34 : f32 to vector<8x128xf32>
      %88 = arith.addf %86, %87 : vector<8x128xf32>
      %89 = vector.extract_strided_slice %72 {offsets = [0, 256], sizes = [8, 128], strides = [1, 1]} : vector<8x512xf32> to vector<8x128xf32>
      %90 = math.tanh %89 : vector<8x128xf32>
      %91 = vector.extract_strided_slice %72 {offsets = [0, 384], sizes = [8, 128], strides = [1, 1]} : vector<8x512xf32> to vector<8x128xf32>
      %cst_35 = arith.constant 5.000000e-01 : f32
      %92 = vector.broadcast %cst_35 : f32 to vector<8x128xf32>
      %93 = arith.mulf %92, %91 : vector<8x128xf32>
      %94 = math.tanh %93 : vector<8x128xf32>
      %cst_36 = arith.constant 5.000000e-01 : f32
      %95 = vector.broadcast %cst_36 : f32 to vector<8x128xf32>
      %96 = arith.mulf %95, %94 : vector<8x128xf32>
      %cst_37 = arith.constant 5.000000e-01 : f32
      %97 = vector.broadcast %cst_37 : f32 to vector<8x128xf32>
      %98 = arith.addf %96, %97 : vector<8x128xf32>
      %99 = arith.mulf %88, %67 : vector<8x128xf32>
      %100 = arith.mulf %80, %90 : vector<8x128xf32>
      %101 = arith.addf %99, %100 : vector<8x128xf32>
      %102 = math.tanh %101 : vector<8x128xf32>
      %103 = arith.mulf %98, %102 : vector<8x128xf32>
      %104 = arith.addi %0, %c1_i32 : i32
      %105 = vector.broadcast %104 : i32 to vector<8x128xi32>
      %106 = arith.cmpi sgt, %17, %105 : vector<8x128xi32>
      %cst_38 = arith.constant 0.000000e+00 : f32
      %107 = vector.broadcast %cst_38 : f32 to vector<8x128xf32>
      %108 = arith.select %106, %103, %107 : vector<8x128xi1>, vector<8x128xf32>
      %109 = arith.index_cast %c1_i32 : i32 to index
      %c0_39 = arith.constant 0 : index
      %c0_40 = arith.constant 0 : index
      %110 = vector.load %arg6[%109, %c0_39, %c0_40] : memref<4x8x128xf32, #tpu.memory_space<vmem>>, vector<1x8x128xf32>
      %111 = vector.shape_cast %110 : vector<1x8x128xf32> to vector<8x128xf32>
      %112 = vector.shape_cast %108 : vector<8x128xf32> to vector<1x8x128xf32>
      tpu.vector_store %arg6[%109, %c0_39, %c0_40], %112 {strides = array<i32>} : memref<4x8x128xf32, #tpu.memory_space<vmem>>, vector<1x8x128xf32>,
      %113 = arith.select %106, %103, %66 : vector<8x128xi1>, vector<8x128xf32>
      %114 = arith.select %106, %101, %67 : vector<8x128xi1>, vector<8x128xf32>
      %c2_i32_41 = arith.constant 2 : i32
      %115 = arith.index_cast %c2_i32_41 : i32 to index
      %c0_42 = arith.constant 0 : index
      %c0_43 = arith.constant 0 : index
      %116 = vector.load %arg4[%115, %c0_42, %c0_43] : memref<4x8x512xf32, #tpu.memory_space<vmem>>, vector<1x8x512xf32>
      %117 = vector.shape_cast %116 : vector<1x8x512xf32> to vector<8x512xf32>
      %cst_44 = arith.constant dense<0.000000e+00> : vector<8x512xf32>
      %118 = tpu.matmul %113, %18, %cst_44 {dimension_numbers = #tpu.dot_dimension_numbers<[1], [0], [0], [1], [0, 0, 1, 1], [], []>} : vector<8x128xf32>, vector<128x512xf32>, vector<8x512xf32> -> vector<8x512xf32>
      %119 = arith.addf %117, %118 : vector<8x512xf32>
      %120 = vector.extract_strided_slice %119 {offsets = [0, 0], sizes = [8, 128], strides = [1, 1]} : vector<8x512xf32> to vector<8x128xf32>
      %cst_45 = arith.constant 5.000000e-01 : f32
      %121 = vector.broadcast %cst_45 : f32 to vector<8x128xf32>
      %122 = arith.mulf %121, %120 : vector<8x128xf32>
      %123 = math.tanh %122 : vector<8x128xf32>
      %cst_46 = arith.constant 5.000000e-01 : f32
      %124 = vector.broadcast %cst_46 : f32 to vector<8x128xf32>
      %125 = arith.mulf %124, %123 : vector<8x128xf32>
      %cst_47 = arith.constant 5.000000e-01 : f32
      %126 = vector.broadcast %cst_47 : f32 to vector<8x128xf32>
      %127 = arith.addf %125, %126 : vector<8x128xf32>
      %128 = vector.extract_strided_slice %119 {offsets = [0, 128], sizes = [8, 128], strides = [1, 1]} : vector<8x512xf32> to vector<8x128xf32>
      %cst_48 = arith.constant 5.000000e-01 : f32
      %129 = vector.broadcast %cst_48 : f32 to vector<8x128xf32>
      %130 = arith.mulf %129, %128 : vector<8x128xf32>
      %131 = math.tanh %130 : vector<8x128xf32>
      %cst_49 = arith.constant 5.000000e-01 : f32
      %132 = vector.broadcast %cst_49 : f32 to vector<8x128xf32>
      %133 = arith.mulf %132, %131 : vector<8x128xf32>
      %cst_50 = arith.constant 5.000000e-01 : f32
      %134 = vector.broadcast %cst_50 : f32 to vector<8x128xf32>
      %135 = arith.addf %133, %134 : vector<8x128xf32>
      %136 = vector.extract_strided_slice %119 {offsets = [0, 256], sizes = [8, 128], strides = [1, 1]} : vector<8x512xf32> to vector<8x128xf32>
      %137 = math.tanh %136 : vector<8x128xf32>
      %138 = vector.extract_strided_slice %119 {offsets = [0, 384], sizes = [8, 128], strides = [1, 1]} : vector<8x512xf32> to vector<8x128xf32>
      %cst_51 = arith.constant 5.000000e-01 : f32
      %139 = vector.broadcast %cst_51 : f32 to vector<8x128xf32>
      %140 = arith.mulf %139, %138 : vector<8x128xf32>
      %141 = math.tanh %140 : vector<8x128xf32>
      %cst_52 = arith.constant 5.000000e-01 : f32
      %142 = vector.broadcast %cst_52 : f32 to vector<8x128xf32>
      %143 = arith.mulf %142, %141 : vector<8x128xf32>
      %cst_53 = arith.constant 5.000000e-01 : f32
      %144 = vector.broadcast %cst_53 : f32 to vector<8x128xf32>
      %145 = arith.addf %143, %144 : vector<8x128xf32>
      %146 = arith.mulf %135, %114 : vector<8x128xf32>
      %147 = arith.mulf %127, %137 : vector<8x128xf32>
      %148 = arith.addf %146, %147 : vector<8x128xf32>
      %149 = math.tanh %148 : vector<8x128xf32>
      %150 = arith.mulf %145, %149 : vector<8x128xf32>
      %151 = arith.addi %0, %c2_i32_41 : i32
      %152 = vector.broadcast %151 : i32 to vector<8x128xi32>
      %153 = arith.cmpi sgt, %17, %152 : vector<8x128xi32>
      %cst_54 = arith.constant 0.000000e+00 : f32
      %154 = vector.broadcast %cst_54 : f32 to vector<8x128xf32>
      %155 = arith.select %153, %150, %154 : vector<8x128xi1>, vector<8x128xf32>
      %156 = arith.index_cast %c2_i32_41 : i32 to index
      %c0_55 = arith.constant 0 : index
      %c0_56 = arith.constant 0 : index
      %157 = vector.load %arg6[%156, %c0_55, %c0_56] : memref<4x8x128xf32, #tpu.memory_space<vmem>>, vector<1x8x128xf32>
      %158 = vector.shape_cast %157 : vector<1x8x128xf32> to vector<8x128xf32>
      %159 = vector.shape_cast %155 : vector<8x128xf32> to vector<1x8x128xf32>
      tpu.vector_store %arg6[%156, %c0_55, %c0_56], %159 {strides = array<i32>} : memref<4x8x128xf32, #tpu.memory_space<vmem>>, vector<1x8x128xf32>,
      %160 = arith.select %153, %150, %113 : vector<8x128xi1>, vector<8x128xf32>
      %161 = arith.select %153, %148, %114 : vector<8x128xi1>, vector<8x128xf32>
      %c3_i32 = arith.constant 3 : i32
      %162 = arith.index_cast %c3_i32 : i32 to index
      %c0_57 = arith.constant 0 : index
      %c0_58 = arith.constant 0 : index
      %163 = vector.load %arg4[%162, %c0_57, %c0_58] : memref<4x8x512xf32, #tpu.memory_space<vmem>>, vector<1x8x512xf32>
      %164 = vector.shape_cast %163 : vector<1x8x512xf32> to vector<8x512xf32>
      %cst_59 = arith.constant dense<0.000000e+00> : vector<8x512xf32>
      %165 = tpu.matmul %160, %18, %cst_59 {dimension_numbers = #tpu.dot_dimension_numbers<[1], [0], [0], [1], [0, 0, 1, 1], [], []>} : vector<8x128xf32>, vector<128x512xf32>, vector<8x512xf32> -> vector<8x512xf32>
      %166 = arith.addf %164, %165 : vector<8x512xf32>
      %167 = vector.extract_strided_slice %166 {offsets = [0, 0], sizes = [8, 128], strides = [1, 1]} : vector<8x512xf32> to vector<8x128xf32>
      %cst_60 = arith.constant 5.000000e-01 : f32
      %168 = vector.broadcast %cst_60 : f32 to vector<8x128xf32>
      %169 = arith.mulf %168, %167 : vector<8x128xf32>
      %170 = math.tanh %169 : vector<8x128xf32>
      %cst_61 = arith.constant 5.000000e-01 : f32
      %171 = vector.broadcast %cst_61 : f32 to vector<8x128xf32>
      %172 = arith.mulf %171, %170 : vector<8x128xf32>
      %cst_62 = arith.constant 5.000000e-01 : f32
      %173 = vector.broadcast %cst_62 : f32 to vector<8x128xf32>
      %174 = arith.addf %172, %173 : vector<8x128xf32>
      %175 = vector.extract_strided_slice %166 {offsets = [0, 128], sizes = [8, 128], strides = [1, 1]} : vector<8x512xf32> to vector<8x128xf32>
      %cst_63 = arith.constant 5.000000e-01 : f32
      %176 = vector.broadcast %cst_63 : f32 to vector<8x128xf32>
      %177 = arith.mulf %176, %175 : vector<8x128xf32>
      %178 = math.tanh %177 : vector<8x128xf32>
      %cst_64 = arith.constant 5.000000e-01 : f32
      %179 = vector.broadcast %cst_64 : f32 to vector<8x128xf32>
      %180 = arith.mulf %179, %178 : vector<8x128xf32>
      %cst_65 = arith.constant 5.000000e-01 : f32
      %181 = vector.broadcast %cst_65 : f32 to vector<8x128xf32>
      %182 = arith.addf %180, %181 : vector<8x128xf32>
      %183 = vector.extract_strided_slice %166 {offsets = [0, 256], sizes = [8, 128], strides = [1, 1]} : vector<8x512xf32> to vector<8x128xf32>
      %184 = math.tanh %183 : vector<8x128xf32>
      %185 = vector.extract_strided_slice %166 {offsets = [0, 384], sizes = [8, 128], strides = [1, 1]} : vector<8x512xf32> to vector<8x128xf32>
      %cst_66 = arith.constant 5.000000e-01 : f32
      %186 = vector.broadcast %cst_66 : f32 to vector<8x128xf32>
      %187 = arith.mulf %186, %185 : vector<8x128xf32>
      %188 = math.tanh %187 : vector<8x128xf32>
      %cst_67 = arith.constant 5.000000e-01 : f32
      %189 = vector.broadcast %cst_67 : f32 to vector<8x128xf32>
      %190 = arith.mulf %189, %188 : vector<8x128xf32>
      %cst_68 = arith.constant 5.000000e-01 : f32
      %191 = vector.broadcast %cst_68 : f32 to vector<8x128xf32>
      %192 = arith.addf %190, %191 : vector<8x128xf32>
      %193 = arith.mulf %182, %161 : vector<8x128xf32>
      %194 = arith.mulf %174, %184 : vector<8x128xf32>
      %195 = arith.addf %193, %194 : vector<8x128xf32>
      %196 = math.tanh %195 : vector<8x128xf32>
      %197 = arith.mulf %192, %196 : vector<8x128xf32>
      %198 = arith.addi %0, %c3_i32 : i32
      %199 = vector.broadcast %198 : i32 to vector<8x128xi32>
      %200 = arith.cmpi sgt, %17, %199 : vector<8x128xi32>
      %cst_69 = arith.constant 0.000000e+00 : f32
      %201 = vector.broadcast %cst_69 : f32 to vector<8x128xf32>
      %202 = arith.select %200, %197, %201 : vector<8x128xi1>, vector<8x128xf32>
      %203 = arith.index_cast %c3_i32 : i32 to index
      %c0_70 = arith.constant 0 : index
      %c0_71 = arith.constant 0 : index
      %204 = vector.load %arg6[%203, %c0_70, %c0_71] : memref<4x8x128xf32, #tpu.memory_space<vmem>>, vector<1x8x128xf32>
      %205 = vector.shape_cast %204 : vector<1x8x128xf32> to vector<8x128xf32>
      %206 = vector.shape_cast %202 : vector<8x128xf32> to vector<1x8x128xf32>
      tpu.vector_store %arg6[%203, %c0_70, %c0_71], %206 {strides = array<i32>} : memref<4x8x128xf32, #tpu.memory_space<vmem>>, vector<1x8x128xf32>,
      %207 = arith.select %200, %197, %160 : vector<8x128xi1>, vector<8x128xf32>
      %208 = arith.select %200, %195, %161 : vector<8x128xi1>, vector<8x128xf32>
      %c4_i32_72 = arith.constant 4 : i32
      %c0_73 = arith.constant 0 : index
      %c0_74 = arith.constant 0 : index
      %209 = vector.load %arg9[%c0_73, %c0_74] : memref<8x128xf32, #tpu.memory_space<vmem>>, vector<8x128xf32>
      tpu.vector_store %arg9[%c0_73, %c0_74], %207 {strides = array<i32>} : memref<8x128xf32, #tpu.memory_space<vmem>>, vector<8x128xf32>,
      %c0_75 = arith.constant 0 : index
      %c0_76 = arith.constant 0 : index
      %210 = vector.load %arg10[%c0_75, %c0_76] : memref<8x128xf32, #tpu.memory_space<vmem>>, vector<8x128xf32>
      tpu.vector_store %arg10[%c0_75, %c0_76], %208 {strides = array<i32>} : memref<8x128xf32, #tpu.memory_space<vmem>>, vector<8x128xf32>,
    } else {
    }
    %c2_i32 = arith.constant 2 : i32
    %12 = arith.cmpi eq, %arg1, %c2_i32 : i32
    %13 = arith.extui %12 : i1 to i32
    %c0_i32_3 = arith.constant 0 : i32
    %14 = arith.cmpi ne, %13, %c0_i32_3 : i32
    scf.if %14 {
      %c0 = arith.constant 0 : index
      %c0_4 = arith.constant 0 : index
      %15 = vector.load %arg9[%c0, %c0_4] : memref<8x128xf32, #tpu.memory_space<vmem>>, vector<8x128xf32>
      %c0_5 = arith.constant 0 : index
      %c0_6 = arith.constant 0 : index
      %16 = vector.load %arg7[%c0_5, %c0_6] : memref<8x128xf32, #tpu.memory_space<vmem>>, vector<8x128xf32>
      tpu.vector_store %arg7[%c0_5, %c0_6], %15 {strides = array<i32>} : memref<8x128xf32, #tpu.memory_space<vmem>>, vector<8x128xf32>,
      %c0_7 = arith.constant 0 : index
      %c0_8 = arith.constant 0 : index
      %17 = vector.load %arg10[%c0_7, %c0_8] : memref<8x128xf32, #tpu.memory_space<vmem>>, vector<8x128xf32>
      %c0_9 = arith.constant 0 : index
      %c0_10 = arith.constant 0 : index
      %18 = vector.load %arg8[%c0_9, %c0_10] : memref<8x128xf32, #tpu.memory_space<vmem>>, vector<8x128xf32>
      tpu.vector_store %arg8[%c0_9, %c0_10], %17 {strides = array<i32>} : memref<8x128xf32, #tpu.memory_space<vmem>>, vector<8x128xf32>,
    } else {
    }
    return
  }
  func.func @transform_0(%arg0: i32, %arg1: i32, %arg2: memref<1xi32, #tpu.memory_space<smem>>) -> (i32, i32) {
    %c0_i32 = arith.constant 0 : i32
    %c0_i32_0 = arith.constant 0 : i32
    return %arg0, %c0_i32 : i32, i32
  }
  func.func @transform_1(%arg0: i32, %arg1: i32, %arg2: memref<1xi32, #tpu.memory_space<smem>>) -> (i32, i32, i32) {
    %c0_i32 = arith.constant 0 : i32
    %c0_i32_0 = arith.constant 0 : i32
    return %arg1, %arg0, %c0_i32 : i32, i32, i32
  }
  func.func @transform_2(%arg0: i32, %arg1: i32, %arg2: memref<1xi32, #tpu.memory_space<smem>>) -> (i32, i32) {
    %c0_i32 = arith.constant 0 : i32
    %c0_i32_0 = arith.constant 0 : i32
    %c0_i32_1 = arith.constant 0 : i32
    return %c0_i32, %c0_i32_0 : i32, i32
  }
  func.func @transform_3(%arg0: i32, %arg1: i32, %arg2: memref<1xi32, #tpu.memory_space<smem>>) -> (i32, i32, i32) {
    %c0_i32 = arith.constant 0 : i32
    %c0_i32_0 = arith.constant 0 : i32
    return %arg1, %arg0, %c0_i32 : i32, i32, i32
  }
  func.func @transform_4(%arg0: i32, %arg1: i32, %arg2: memref<1xi32, #tpu.memory_space<smem>>) -> (i32, i32) {
    %c0_i32 = arith.constant 0 : i32
    %c0_i32_0 = arith.constant 0 : i32
    return %arg0, %c0_i32 : i32, i32
  }
  func.func @transform_5(%arg0: i32, %arg1: i32, %arg2: memref<1xi32, #tpu.memory_space<smem>>) -> (i32, i32) {
    %c0_i32 = arith.constant 0 : i32
    %c0_i32_0 = arith.constant 0 : i32
    return %arg0, %c0_i32 : i32, i32
  }
}

</mosaic_0001>

<bundles_post_ra>
// kernel: tpu_custom_call.1
= control target key start
LH: loop header
LB: loop body
LE: loop exit
PB: predicated region body
PF: predicated region fallthrough
CT: control target
= control target key end

     0   :  { %s2513_s0 = inlined_call_operand.<no memory space> [shape: s32[1], index: 0, kind: input, shape index: {}]   ;;  %s2514_s1 = inlined_call_operand.vmem [shape: s32[8,1], index: 1, kind: input, shape index: {}]   ;;  %s2515_s2 = inlined_call_operand.hbm [shape: f32[12,8,512], index: 2, kind: input, shape index: {}]   ;;  %s2516_s3 = inlined_call_operand.hbm [shape: f32[128,512], index: 3, kind: input, shape index: {}]   ;;  %s2517_s4 = inlined_call_operand.hbm [shape: f32[12,8,128], index: 4, kind: output, shape index: {0}]   ;;  %s2518_s5 = inlined_call_operand.hbm [shape: f32[8,128], index: 5, kind: output, shape index: {1}]   ;;  %s2519_s6 = inlined_call_operand.hbm [shape: f32[8,128], index: 6, kind: output, shape index: {2}]  }
   0x1   :  { %12 = sst [smem:[#allocation5]] %s2513_s0 }
   0x2   :  { %13 = vsyncpa [#allocation7], 0 }
   0x3   :  { %15 = vsyncpa [#allocation7 + $0x1], 0 }
   0x4   :  { %16 = vsyncpa [#allocation10], 0 }
   0x5   :  { %17 = vsyncpa [#allocation8], 0 }
   0x6   :  { %19 = vsyncpa [#allocation8 + $0x1], 0 }
   0x7   :  { %20 = vsyncpa [#allocation13], 0  ;;  %s1977_s23 = smov 0   ;;  %s1979_s24 = smov 0  }
   0x8   :  { %s1981_s25 = smov 0   ;;  %s1983_s26 = smov 0  }
   0x9   :  { %s1985_s27 = smov 0   ;;  %s1987_s28 = smov 0  }
   0xa LB: > { %s1286_s0 = sadd.s32 4294967295, %s1924_s28   ;;  %s1287_s29 = sadd.s32 4294967294, %s1924_s28   ;;  %s1924_s28 = sphi %s1987_s28, %s26_s28   ;;  %s1920_s27 = sphi %s1985_s27, %s2548_s27   ;;  %s1916_s26 = sphi %s1983_s26, %s2547_s26   ;;  %s1912_s25 = sphi %s1981_s25, %s2546_s25   ;;  %s1908_s24 = sphi %s1979_s24, %s2545_s24   ;;  %s1904_s23 = sphi %s1977_s23, %s2544_s23  }
   0xb   : > { %p86_p0 = scmp.ne.s32.totalorder %s1908_s24, %s1904_s23  ;;  %p2011_p1 = scmp.eq.s32.totalorder %s1286_s0, 0 }
   0xc   : > { %p2015_p2 = scmp.eq.s32.totalorder %s1286_s0, 2  ;;  %p139_p3 = scmp.eq.s32.totalorder %s1287_s29, 2 }
   0xd   : > { %s2527_s30 = scalar_select %p2011_p1, 1, 0 }
   0xe   : > { %s2528_s7 = scalar_select %p2015_p2, 1, 0 }
   0xf   : > { %p2021_p4 = por %p2011_p1, %p86_p0  ;;  %p1288_p5 = scmp.ge.s32.totalorder %s1924_s28, 1 }
  0x10   : > { %p2026_p6 = por %p139_p3, %p86_p0  ;;  %p198_p7 = scmp.lt.s32.totalorder %s1924_s28, 4 }
  0x11   : > { %s2529_s8 = scalar_select %p2021_p4, 1, 0 }
  0x12   : > { %s2530_s9 = scalar_select %p2026_p6, 1, 0 }
  0x13   : > { %p2031_p8 = pnand %p1288_p5, %p198_p7  ;;  %s1926_s11 = smov [#allocation9]  }
  0x14   : > { %s217_s12 = sshll.u32 %s1926_s11, 4  ;;  %s35_s14 = sadd.s32 1, %s1920_s27  ;;  %s218_s12 = int_to_ptr.vmem [resolvable:$true] %s217_s12 }
  0x15   : > { %s2531_s10 = scalar_select %p2031_p8, 1, 0 }
  0x16   : > { %p1604_p9 = pneg %p2031_p8  ;;  %s1724_s17 = scalar_lea.hbm %s2516_s3, 8192 }
  0x17   : > { %p1725_p11 = scmp.ne.s32.totalorder %s2516_s3, %s1724_s17  ;;  %p1731_p3 = scmp.lt.u32.totalorder %s1724_s17, %s2516_s3 }
  0x18   : > { %p2039_p10 = pnand %p1604_p9, %p2011_p1 }
  0x1a   : > { %p1726_p12 = pneg %p2039_p10 }
  0x1c   : > { %p1727_p13 = pnand %p1726_p12, %p1725_p11 }
  0x1e   : > { %p1728_p0 = pneg %p1727_p13 }
  0x20   : > { %p1733_p5 = pnand %p1731_p3, %p1728_p0 }
  0x22   : > { %1736 = shalt.err (!%p1733_p5)
}
  0x23   : > { %s1737_s22 = scalar_lea.vmem %s218_s12, 8192  ;;  %p1745_p1 = scmp.lt.s32.totalorder %s218_s12, %s218_s12 }
  0x24   : > { %p1738_p7 = scmp.ne.s32.totalorder %s218_s12, %s1737_s22  ;;  %p1746_p4 = scmp.lt.s32.totalorder %s1737_s22, %s1737_s22 }
  0x26   : > { %p1740_p9 = pnand %p1738_p7, %p1726_p12  ;;  %p1747_p8 = por %p1746_p4, %p1745_p1 }
  0x28   : > { %p1741_p6 = pneg %p1740_p9 }
  0x2a   : > { %p1748_p2 = pnand %p1747_p8, %p1741_p6 }
  0x2c   : > { %1751 = shalt.err (!%p1748_p2)
}
  0x2d   : > { %s2525_s0 = smov 512   ;;  %s2526_s29 = smov 32  }
  0x2e   : > { %1607 = dma.hbm_to_vmem [thread:$0]  (!%p2039_p10), %s2516_s3, 8192, %s218_s12, [#allocation10], %s2525_s0, %s2525_s0, %s2526_s29  }
  0x2f   : > { %p36_p1 = scmp.ge.s32.totalorder %s35_s14, 3  ;;  %s73_s16 = sadd.s32 1, %s1912_s25 }
  0x30   : > { %p80_p2 = scmp.ne.s32.totalorder %s1912_s25, %s1908_s24  ;;  %p81_p4 = scmp.eq.s32.totalorder %s1924_s28, 0 }
  0x31   : > { %s2550_s14 = smov (%p36_p1, %s35_s14), 0  ;;  %p2534_p8 = scmp.ne.s32.totalorder %s2528_s7, 0 }
  0x32   : > { %p2069_p6 = por %p81_p4, %p80_p2  ;;  %s68_s18 = ssub.s32 %s1920_s27, %s2550_s14 }
  0x33   : > { %p2075_p11 = por %p2534_p8, %p80_p2  ;;  %p1617_p12 = scmp.lt.s32.totalorder %s1924_s28, 3 }
  0x34   : > { %p71_p10 = scmp.eq.s32.totalorder %s68_s18, 0  ;;  %s231_s12 = sand.u32 1, %s1912_s25  }
  0x35   : > { %s1292_s19 = sshll.u32 %s231_s12, 7  ;;  %s1330_s21 = sshll.u32 %s1920_s27, 11 }
  0x36   : > { %s2084_s20 = scalar_select %p71_p10, %s1912_s25, %s73_s16  }
  0x37   : > { %s2090_s15 = scalar_lea.hbm %s2515_s2, %s1330_s21  ;;  %s235_s0 = scalar_lea.vmem [#allocation6], %s1292_s19 }
  0x38   : > { %s245_s29 = sshll.u32 %s235_s0, 4  ;;  %p2096_p13 = pnand %p1617_p12, %p2069_p6  ;;  %s2092_s29 = int_to_ptr.vmem [resolvable:$true] %s245_s29 }
  0x39   : > { %s2100_s16 = scalar_lea.sflag [#allocation7], %s231_s12  ;;  %s1752_s22 = scalar_lea.hbm %s2090_s15, 2048 }
  0x3a   : > { %p1753_p0 = scmp.ne.s32.totalorder %s2090_s15, %s1752_s22  ;;  %p1754_p3 = pneg %p2096_p13 }
  0x3b   : > { %s1757_s17 = scalar_lea.hbm %s2515_s2, 6144  ;;  %p1758_p9 = scmp.lt.u32.totalorder %s2090_s15, %s2515_s2 }
  0x3c   : > { %p1755_p5 = pnand %p1754_p3, %p1753_p0  ;;  %p1759_p1 = scmp.lt.u32.totalorder %s1757_s17, %s1752_s22 }
  0x3d   : > { %p1761_p4 = scmp.lt.u32.totalorder %s1752_s22, %s2090_s15 }
  0x3e   : > { %p1756_p7 = pneg %p1755_p5  ;;  %p1760_p2 = por %p1759_p1, %p1758_p9 }
  0x40   : > { %p1762_p6 = por %p1761_p4, %p1760_p2 }
  0x42   : > { %p1763_p8 = pnand %p1762_p6, %p1756_p7 }
  0x44   : > { %1766 = shalt.err (!%p1763_p8)
}
  0x45   : > { %s1767_s12 = scalar_lea.vmem %s2092_s29, 2048  ;;  %s1929_s0 = smov [#allocation6]  }
  0x46   : > { %p1768_p12 = scmp.ne.s32.totalorder %s2092_s29, %s1767_s12  ;;  %s1772_s19 = sshll.u32 %s1929_s0, 4  ;;  %s1773_s19 = int_to_ptr.vmem [resolvable:$false] %s1772_s19 }
  0x47   : > { %s1774_s21 = scalar_lea.vmem %s1773_s19, 4096  ;;  %p1775_p5 = scmp.lt.s32.totalorder %s2092_s29, %s1773_s19 }
  0x48   : > { %p1770_p10 = pnand %p1768_p12, %p1754_p3  ;;  %p1776_p9 = scmp.lt.s32.totalorder %s1774_s21, %s1767_s12 }
  0x4a   : > { %p1771_p0 = pneg %p1770_p10  ;;  %p1777_p1 = por %p1776_p9, %p1775_p5 }
  0x4c   : > { %p1778_p2 = pnand %p1777_p1, %p1771_p0 }
  0x4e   : > { %1781 = shalt.err (!%p1778_p2)
}
  0x4f   : > { %s2537_s22 = smov 32   ;;  %s2538_s17 = smov 512  }
  0x50   : > { %1611 = dma.hbm_to_vmem [thread:$0]  (!%p2096_p13), %s2090_s15, 2048, %s2092_s29, %s2100_s16, %s2538_s17, %s2538_s17, %s2537_s22  }
  0x51   : > { %p2539_p3 = scmp.ne.s32.totalorder %s2531_s10, 0 }
  0x52   : > { %s2134_s11 = sand.u32 (!%p2539_p3), 1, %s1908_s24   ;;  %p2540_p7 = scmp.ne.s32.totalorder (!%p2539_p3), %s2529_s8, 0 }
  0x53   : > { %257 = sbr.rel (%p2539_p3) target bundleno = 1234 (0x4d2), region = 32  ;;  %s1297_s12 = sshll.u32 (!%p2539_p3), %s2134_s11, 7 }
  0x54   : > { %s260_s0 = scalar_lea.sflag (!%p2539_p3), [#allocation7], %s2134_s11  ;;  %s2138_s19 = scalar_lea.vmem (!%p2539_p3), [#allocation6], %s1297_s12 }
  0x5a   : > { %1887 = dma.done.wait (%p2540_p7), %s260_s0, 2048  }
  0x5b   : > { %1889 = vsyncadd (%p2540_p7), %s260_s0, 4294965248  ;;  %p2541_p13 = scmp.ne.s32.totalorder %s2527_s30, 0 }
  0x5d   : > { %1891 = dma.done.wait (%p2541_p13), [#allocation10], 8192  }
  0x5e   : > { %1893 = vsyncadd (%p2541_p13), [#allocation10], 4294959104  ;;  %s1299_s10 = sshll.u32 %s2134_s11, 5  ;;  %s2150_s29 = sshll.u32 %s1916_s26, 2 }
  0x5f   : > { %s305_s15 = sld [smem:[#allocation5]]  ;;  %s2152_s18 = scalar_lea.vmem [#allocation11], %s1299_s10 }
  0x60   : > { %p1301_p4 = scmp.ne.s32.totalorder %s1916_s26, 0 }
  0x61   : > { %v1930_v0 = vmov (!%p1301_p4), 0.0  }
  0x62   : > { %309 = sbr.rel (%p1301_p4) target bundleno = 105 (0x69), region = 44  ;;  %310 = vst [vmem:[#allocation2] sm:$0xff] (!%p1301_p4), %v1930_v0  ;;  %311 = vst [vmem:[#allocation3] sm:$0xff] (!%p1301_p4), %v1930_v0 }
  0x69 PF: > { %p1302_p6 = scmp.lt.s32.totalorder %s2150_s29, %s305_s15 }
  0x6a   : > { %v1931_v1 = vmov (!%p1302_p6), 0.0  }
  0x6b   : > { %315 = sbr.rel (%p1302_p6) target bundleno = 114 (0x72), region = 48  ;;  %316 = vst [vmem:[%s2152_s18] sm:$0xff] (!%p1302_p6), %v1931_v1  ;;  %317 = vst [vmem:[%s2152_s18 + $0x8] sm:$0xff] (!%p1302_p6), %v1931_v1 }
  0x6c   : > { %318 = vst [vmem:[%s2152_s18 + $0x10] sm:$0xff] (!%p1302_p6), %v1931_v1  ;;  %319 = vst [vmem:[%s2152_s18 + $0x18] sm:$0xff] (!%p1302_p6), %v1931_v1 }
  0x72 PF: > { %p1303_p8 = scmp.ge.s32.totalorder %s2150_s29, %s305_s15 }
  0x73   : > { %v329_v2 = vld [vmem:[#allocation9 + $0x8] sm:$0xff] (!%p1303_p8)  ;;  %v328_v4 = vld [vmem:[#allocation9] sm:$0xff] (!%p1303_p8)  ;;  %v1932_v9 = vmov (!%p1303_p8), 0.0   ;;  %v331_v14 = vld [vmem:[#allocation9 + $0x18] sm:$0xff] (!%p1303_p8)  ;;  %v1933_v15 = vmov (!%p1303_p8), 0   ;;  %s737_s16 = sadd.s32 (!%p1303_p8), 1, %s2150_s29 }
  0x74   : > { %323 = sbr.rel (%p1303_p8) target bundleno = 1152 (0x480), region = 52  ;;  %v333_v3 = vld [vmem:[#allocation9 + $0x28] sm:$0xff] (!%p1303_p8)  ;;  %v332_v6 = vld [vmem:[#allocation9 + $0x20] sm:$0xff] (!%p1303_p8)  ;;  %462 = vmatprep.mubr.f32.mxu0 (!%p1303_p8), %v1932_v9  ;;  %533 = vmatprep.mubr.f32.mxu1 (!%p1303_p8), %v1932_v9  ;;  %v335_v16 = vld [vmem:[#allocation9 + $0x38] sm:$0xff] (!%p1303_p8)  ;;  %s914_s21 = sadd.s32 (!%p1303_p8), 2, %s2150_s29 }
  0x75   : > { %v2161_v5 = vpack.c.bf16 (!%p1303_p8), %v333_v3, %v329_v2  ;;  %v337_v7 = vld [vmem:[#allocation9 + $0x48] sm:$0xff] (!%p1303_p8)  ;;  %v2165_v10 = vpack.c.bf16 (!%p1303_p8), %v332_v6, %v328_v4  ;;  %v336_v12 = vld [vmem:[#allocation9 + $0x40] sm:$0xff] (!%p1303_p8)  ;;  %1683 = vset.pattern.permute.xlu0 (!%p1303_p8), %v1933_v15  ;;  %v330_v17 = vld [vmem:[#allocation9 + $0x10] sm:$0xff] (!%p1303_p8)  ;;  %v2173_v20 = vpack.c.bf16 (!%p1303_p8), %v335_v16, %v331_v14  ;;  %s1091_s22 = sadd.s32 (!%p1303_p8), 3, %s2150_s29 }
  0x76   : > { %v341_v8 = vld [vmem:[#allocation9 + $0x68] sm:$0xff] (!%p1303_p8)  ;;  %v340_v13 = vld [vmem:[#allocation9 + $0x60] sm:$0xff] (!%p1303_p8)  ;;  %v334_v18 = vld [vmem:[#allocation9 + $0x30] sm:$0xff] (!%p1303_p8) }
  0x77   : > { %v2167_v11 = vpack.c.bf16 (!%p1303_p8), %v341_v8, %v337_v7  ;;  %1333 = vmatprep.subr.bf16.mxu0 (!%p1303_p8), %v2161_v5  ;;  %v2171_v19 = vpack.c.bf16 (!%p1303_p8), %v340_v13, %v336_v12  ;;  %v2175_v21 = vpack.c.bf16 (!%p1303_p8), %v334_v18, %v330_v17  ;;  %v345_v22 = vld [vmem:[#allocation9 + $0x88] sm:$0xff] (!%p1303_p8)  ;;  %v344_v24 = vld [vmem:[#allocation9 + $0x80] sm:$0xff] (!%p1303_p8)  ;;  %v339_v27 = vld [vmem:[#allocation9 + $0x58] sm:$0xff] (!%p1303_p8)  ;;  %1365 = vmatprep.subr.bf16.mxu1 (!%p1303_p8), %v2173_v20 }
  0x78   : > { %1335 = vmatpush1.bf16.msra.mxu0 (!%p1303_p8), %v2165_v10  ;;  %v349_v23 = vld [vmem:[#allocation9 + $0xa8] sm:$0xff] (!%p1303_p8)  ;;  %v348_v26 = vld [vmem:[#allocation9 + $0xa0] sm:$0xff] (!%p1303_p8)  ;;  %v343_v28 = vld [vmem:[#allocation9 + $0x78] sm:$0xff] (!%p1303_p8) }
  0x79   : > { %1337 = vmatprep.subr.bf16.mxu0 (!%p1303_p8), %v2167_v11  ;;  %v2178_v25 = vpack.c.bf16 (!%p1303_p8), %v349_v23, %v345_v22  ;;  %v2181_v29 = vpack.c.bf16 (!%p1303_p8), %v343_v28, %v339_v27  ;;  %v338_v30 = vld [vmem:[#allocation9 + $0x50] sm:$0xff] (!%p1303_p8)  ;;  %v353_v32 = vld [vmem:[#allocation9 + $0xc8] sm:$0xff] (!%p1303_p8)  ;;  %1367 = vmatpush1.bf16.msra.mxu1 (!%p1303_p8), %v2175_v21  ;;  %v2187_v35 = vpack.c.bf16 (!%p1303_p8), %v348_v26, %v344_v24  ;;  %v347_v36 = vld [vmem:[#allocation9 + $0x98] sm:$0xff] (!%p1303_p8) }
  0x7a   : > { %v342_v31 = vld [vmem:[#allocation9 + $0x70] sm:$0xff] (!%p1303_p8)  ;;  %v357_v34 = vld [vmem:[#allocation9 + $0xe8] sm:$0xff] (!%p1303_p8)  ;;  %v351_v37 = vld [vmem:[#allocation9 + $0xb8] sm:$0xff] (!%p1303_p8) }
  0x7b   : > { %v2184_v33 = vpack.c.bf16 %v342_v31, %v338_v30  ;;  %1369 = vmatprep.subr.bf16.mxu1 %v2181_v29  ;;  %v346_v38 = vld [vmem:[#allocation9 + $0x90] sm:$0xff]  ;;  %v2191_v39 = vpack.c.bf16 %v357_v34, %v353_v32  ;;  %v352_v40 = vld [vmem:[#allocation9 + $0xc0] sm:$0xff]  ;;  %v2193_v42 = vpack.c.bf16 %v351_v37, %v347_v36  ;;  %v361_v44 = vld [vmem:[#allocation9 + $0x108] sm:$0xff] }
  0x7c   : > { %1339 = vmatpush1.bf16.msra.mxu0 %v2171_v19  ;;  %v356_v41 = vld [vmem:[#allocation9 + $0xe0] sm:$0xff]  ;;  %v350_v43 = vld [vmem:[#allocation9 + $0xb0] sm:$0xff]  ;;  %v365_v45 = vld [vmem:[#allocation9 + $0x128] sm:$0xff] }
  0x7d   : > { %1341 = vmatprep.subr.bf16.mxu0 %v2178_v25  ;;  %v355_v46 = vld [vmem:[#allocation9 + $0xd8] sm:$0xff]  ;;  %1371 = vmatpush1.bf16.msra.mxu1 %v2184_v33  ;;  %v2196_v47 = vpack.c.bf16 %v350_v43, %v346_v38  ;;  %v2199_v49 = vpack.c.bf16 %v356_v41, %v352_v40  ;;  %v360_v50 = vld [vmem:[#allocation9 + $0x100] sm:$0xff]  ;;  %v354_v52 = vld [vmem:[#allocation9 + $0xd0] sm:$0xff]  ;;  %v2205_v54 = vpack.c.bf16 %v365_v45, %v361_v44 }
  0x7e   : > { %v359_v48 = vld [vmem:[#allocation9 + $0xf8] sm:$0xff]  ;;  %1373 = vmatprep.subr.bf16.mxu1 %v2193_v42  ;;  %v358_v53 = vld [vmem:[#allocation9 + $0xf0] sm:$0xff]  ;;  %v364_v55 = vld [vmem:[#allocation9 + $0x120] sm:$0xff] }
  0x7f   : > { %v2202_v51 = vpack.c.bf16 %v359_v48, %v355_v46  ;;  %v363_v56 = vld [vmem:[#allocation9 + $0x118] sm:$0xff]  ;;  %v369_v58 = vld [vmem:[#allocation9 + $0x148] sm:$0xff]  ;;  %v2208_v60 = vpack.c.bf16 %v358_v53, %v354_v52  ;;  %v2211_v61 = vpack.c.bf16 %v364_v55, %v360_v50  ;;  %v368_v62 = vld [vmem:[#allocation9 + $0x140] sm:$0xff] }
  0x80   : > { %1343 = vmatpush1.bf16.msra.mxu0 %v2187_v35  ;;  %v367_v57 = vld [vmem:[#allocation9 + $0x138] sm:$0xff]  ;;  %v373_v59 = vld [vmem:[#allocation9 + $0x168] sm:$0xff]  ;;  %v362_v0 = vld [vmem:[#allocation9 + $0x110] sm:$0xff] }
  0x81   : > { %1345 = vmatprep.subr.bf16.mxu0 %v2191_v39  ;;  %1375 = vmatpush1.bf16.msra.mxu1 %v2196_v47  ;;  %v2214_v63 = vpack.c.bf16 %v367_v57, %v363_v56  ;;  %v366_v1 = vld [vmem:[#allocation9 + $0x130] sm:$0xff]  ;;  %v2217_v2 = vpack.c.bf16 %v373_v59, %v369_v58  ;;  %v372_v3 = vld [vmem:[#allocation9 + $0x160] sm:$0xff]  ;;  %v371_v4 = vld [vmem:[#allocation9 + $0x158] sm:$0xff] }
  0x82   : > { %1377 = vmatprep.subr.bf16.mxu1 %v2202_v51  ;;  %v375_v6 = vld [vmem:[#allocation9 + $0x178] sm:$0xff]  ;;  %v377_v7 = vld [vmem:[#allocation9 + $0x188] sm:$0xff]  ;;  %v2220_v12 = vpack.c.bf16 %v366_v1, %v362_v0  ;;  %v376_v13 = vld [vmem:[#allocation9 + $0x180] sm:$0xff]  ;;  %v2223_v14 = vpack.c.bf16 %v372_v3, %v368_v62 }
  0x83   : > { %v381_v8 = vld [vmem:[#allocation9 + $0x1a8] sm:$0xff]  ;;  %v380_v15 = vld [vmem:[#allocation9 + $0x1a0] sm:$0xff]  ;;  %v2226_v16 = vpack.c.bf16 %v375_v6, %v371_v4  ;;  %v370_v17 = vld [vmem:[#allocation9 + $0x150] sm:$0xff] }
  0x84   : > { %1347 = vmatpush1.bf16.msra.mxu0 %v2199_v49  ;;  %v374_v18 = vld [vmem:[#allocation9 + $0x170] sm:$0xff]  ;;  %v2229_v22 = vpack.c.bf16 %v381_v8, %v377_v7  ;;  %v379_v23 = vld [vmem:[#allocation9 + $0x198] sm:$0xff]  ;;  %v385_v27 = vld [vmem:[#allocation9 + $0x1c8] sm:$0xff]  ;;  %v2238_v31 = vpack.c.bf16 %v380_v15, %v376_v13 }
  0x85   : > { %1349 = vmatprep.subr.bf16.mxu0 %v2205_v54  ;;  %1379 = vmatpush1.bf16.msra.mxu1 %v2208_v60  ;;  %v383_v24 = vld [vmem:[#allocation9 + $0x1b8] sm:$0xff]  ;;  %v324_v26 = vld [vmem:[%s2514_s1] sm:$0xff]  ;;  %v389_v28 = vld [vmem:[#allocation9 + $0x1e8] sm:$0xff]  ;;  %v2235_v30 = vpack.c.bf16 %v374_v18, %v370_v17 }
  0x86   : > { %1381 = vmatprep.subr.bf16.mxu1 %v2214_v63  ;;  %326 = vperm.xlu0 %1683, %v324_v26   ;;  %v384_v32 = vld [vmem:[#allocation9 + $0x1c0] sm:$0xff]  ;;  %v2241_v34 = vpack.c.bf16 %v383_v24, %v379_v23  ;;  %v378_v36 = vld [vmem:[#allocation9 + $0x190] sm:$0xff]  ;;  %v2244_v38 = vpack.c.bf16 %v389_v28, %v385_v27  ;;  %v387_v41 = vld [vmem:[#allocation9 + $0x1d8] sm:$0xff] }
  0x87   : > { %v382_v37 = vld [vmem:[#allocation9 + $0x1b0] sm:$0xff]  ;;  %v388_v40 = vld [vmem:[#allocation9 + $0x1e0] sm:$0xff]  ;;  %v391_v43 = vld [vmem:[#allocation9 + $0x1f8] sm:$0xff] }
  0x88   : > { %1351 = vmatpush1.bf16.msra.mxu0 %v2211_v61  ;;  %v2247_v44 = vpack.c.bf16 %v382_v37, %v378_v36  ;;  %v2250_v45 = vpack.c.bf16 %v388_v40, %v384_v32  ;;  %v2253_v46 = vpack.c.bf16 %v391_v43, %v387_v41  ;;  %v386_v48 = vld [vmem:[#allocation9 + $0x1d0] sm:$0xff]  ;;  %v394_v55 = vld [vmem:[%s2138_s19] sm:$0xff]  ;;  %v395_v56 = vld [vmem:[%s2138_s19 + $0x8] sm:$0xff]  ;;  %v562_v36 = vstv %s2150_s29 }
  0x89   : > { %1353 = vmatprep.subr.bf16.mxu0 %v2217_v2  ;;  %1383 = vmatpush1.bf16.msra.mxu1 %v2220_v12  ;;  %v390_v50 = vld [vmem:[#allocation9 + $0x1f0] sm:$0xff]  ;;  %v397_v8 = vld [vmem:[%s2138_s19 + $0x18] sm:$0xff] }
  0x8a   : > { %1385 = vmatprep.subr.bf16.mxu1 %v2226_v16  ;;  %v2257_v52 = vpack.c.bf16 %v390_v50, %v386_v48  ;;  %v2260_v53 = vld [vmem:[#allocation2] sm:$0xff]  ;;  %v393_v28 = vld [vmem:[#allocation3] sm:$0xff] }
  0x8b   : > { %v396_v62 = vld [vmem:[%s2138_s19 + $0x10] sm:$0xff] }
  0x8c   : > { %1355 = vmatpush1.bf16.msra.mxu0 %v2223_v14 }
  0x8d   : > { %1357 = vmatprep.subr.bf16.mxu0 %v2229_v22  ;;  %1387 = vmatpush1.bf16.msra.mxu1 %v2235_v30 }
  0x8e   : > { %1389 = vmatprep.subr.bf16.mxu1 %v2241_v34 }
  0x90   : > { %1359 = vmatpush1.bf16.msra.mxu0 %v2238_v31 }
  0x91   : > { %1361 = vmatprep.subr.bf16.mxu0 %v2244_v38  ;;  %1391 = vmatpush1.bf16.msra.mxu1 %v2247_v44 }
  0x92   : > { %1393 = vmatprep.subr.bf16.mxu1 %v2253_v46 }
  0x94   : > { %1363 = vmatpush1.bf16.msra.mxu0 %v2250_v45 }
  0x95   : > { %1397 = vmatprep.subr.bf16.mxu0 %v2161_v5  ;;  %1395 = vmatpush1.bf16.msra.mxu1 %v2257_v52 }
  0x96   : > { %1429 = vmatprep.subr.bf16.mxu1 %v2173_v20 }
  0x97   : > { %463 = vmatmul.mubr.f32.vlgmr.msra.gmra.mrb[0].mxu0 %v2260_v53 }
  0x98   : > { %1399 = vmatpush1.bf16.msra.mxu0 %v2165_v10  ;;  %637 = vmatprep.mubr.f32.mxu0 %v1932_v9 }
  0x99   : > { %1401 = vmatprep.subr.bf16.mxu0 %v2167_v11  ;;  %534 = vmatmul.mubr.f32.vlgmr.msra.gmra.mrb[0].mxu1 %v2260_v53 }
  0x9a   : > { %1431 = vmatpush1.bf16.msra.mxu1 %v2175_v21  ;;  %708 = vmatprep.mubr.f32.mxu1 %v1932_v9 }
  0x9b   : > { %1433 = vmatprep.subr.bf16.mxu1 %v2181_v29 }
  0x9c   : > { %1403 = vmatpush1.bf16.msra.mxu0 %v2171_v19 }
  0x9d   : > { %1405 = vmatprep.subr.bf16.mxu0 %v2178_v25 }
  0x9e   : > { %1435 = vmatpush1.bf16.msra.mxu1 %v2184_v33 }
  0x9f   : > { %1437 = vmatprep.subr.bf16.mxu1 %v2193_v42 }
  0xa0   : > { %1407 = vmatpush1.bf16.msra.mxu0 %v2187_v35 }
  0xa1   : > { %1409 = vmatprep.subr.bf16.mxu0 %v2191_v39 }
  0xa2   : > { %1439 = vmatpush1.bf16.msra.mxu1 %v2196_v47 }
  0xa3   : > { %1441 = vmatprep.subr.bf16.mxu1 %v2202_v51 }
  0xa4   : > { %1411 = vmatpush1.bf16.msra.mxu0 %v2199_v49 }
  0xa5   : > { %1413 = vmatprep.subr.bf16.mxu0 %v2205_v54 }
  0xa6   : > { %1443 = vmatpush1.bf16.msra.mxu1 %v2208_v60 }
  0xa7   : > { %1445 = vmatprep.subr.bf16.mxu1 %v2214_v63 }
  0xa8   : > { %1415 = vmatpush1.bf16.msra.mxu0 %v2211_v61 }
  0xa9   : > { %1417 = vmatprep.subr.bf16.mxu0 %v2217_v2 }
  0xaa   : > { %1447 = vmatpush1.bf16.msra.mxu1 %v2220_v12 }
  0xab   : > { %1449 = vmatprep.subr.bf16.mxu1 %v2226_v16 }
  0xac   : > { %1419 = vmatpush1.bf16.msra.mxu0 %v2223_v14 }
  0xad   : > { %1421 = vmatprep.subr.bf16.mxu0 %v2229_v22 }
  0xae   : > { %1451 = vmatpush1.bf16.msra.mxu1 %v2235_v30 }
  0xaf   : > { %1453 = vmatprep.subr.bf16.mxu1 %v2241_v34 }
  0xb0   : > { %1423 = vmatpush1.bf16.msra.mxu0 %v2238_v31 }
  0xb1   : > { %1425 = vmatprep.subr.bf16.mxu0 %v2244_v38 }
  0xb2   : > { %1455 = vmatpush1.bf16.msra.mxu1 %v2247_v44 }
  0xb3   : > { %1457 = vmatprep.subr.bf16.mxu1 %v2253_v46 }
  0xb4   : > { %1427 = vmatpush1.bf16.msra.mxu0 %v2250_v45 }
  0xb5   : > { %1461 = vmatprep.subr.bf16.mxu0 %v2161_v5 }
  0xb6   : > { %1459 = vmatpush1.bf16.msra.mxu1 %v2257_v52 }
  0xb7   : > { %1493 = vmatprep.subr.bf16.mxu1 %v2173_v20 }
 0x105   : > { %v2307_v37 = vpop.permute.xlu0 %326 }
 0x106   : > { %vm563_vm0 = vcmp.gt.s32.totalorder %v2307_v37, %v562_v36 }
 0x16a   : > { %v464_v57 = vpop.f32.mrb[0].mxu0 }
 0x16b   : > { %v540_v58 = vadd.f32 %v464_v57, %v394_v55  ;;  %v466_v59 = vpop.f32.mrb[1].mxu0 }
 0x16c   : > { %v541_v0 = vadd.f32 %v466_v59, %v395_v56  ;;  %v535_v3 = vpop.f32.mrb[0].mxu1 }
 0x16d   : > { %v544_v1 = vmul.f32 0.5, %v540_v58  ;;  %v542_v6 = vadd.f32 %v535_v3, %v396_v62  ;;  %v537_v7 = vpop.f32.mrb[1].mxu1 }
 0x16e   : > { %v548_v4 = vmul.f32 0.5, %v541_v0  ;;  %v543_v13 = vadd.f32 %v537_v7, %v397_v8  ;;  %v1305_v0 = vld [vmem:[%s2138_s19 + $0x28] sm:$0xff]  ;;  %v1306_v8 = vld [vmem:[%s2138_s19 + $0x30] sm:$0xff] }
 0x16f   : > { %1684 = vtanh.f32 %v544_v1 }
 0x170   : > { %1686 = vtanh.f32 %v548_v4  ;;  %v553_v15 = vmul.f32 0.5, %v543_v13 }
 0x171   : > { %1688 = vtanh.f32 %v542_v6 }
 0x172   : > { %1690 = vtanh.f32 %v553_v15 }
 0x179   : > { %v1685_v17 = vpop.eup %1684 }
 0x17a   : > { %v1687_v18 = vpop.eup %1686  ;;  %v546_v23 = vmul.f32 0.5, %v1685_v17 }
 0x17b   : > { %v1689_v24 = vpop.eup %1688  ;;  %v550_v26 = vmul.f32 0.5, %v1687_v18 }
 0x17c   : > { %v547_v27 = vadd.f32 0.5, %v546_v23  ;;  %v1691_v50 = vpop.eup %1690  ;;  %v1307_v23 = vld [vmem:[%s2138_s19 + $0x38] sm:$0xff] }
 0x17d   : > { %v551_v32 = vadd.f32 0.5, %v550_v26  ;;  %v555_v55 = vmul.f32 0.5, %v1691_v50 }
 0x17e   : > { %v558_v40 = vmul.f32 %v1689_v24, %v547_v27 }
 0x17f   : > { %v557_v41 = vmul.f32 %v551_v32, %v393_v28  ;;  %v556_v56 = vadd.f32 0.5, %v555_v55 }
 0x181   : > { %v559_v43 = vadd.f32 %v558_v40, %v557_v41 }
 0x183   : > { %1692 = vtanh.f32 %v559_v43  ;;  %v2310_v48 = vsel %vm563_vm0, %v559_v43, %v393_v28  ;;  %v738_v43 = vstv %s737_s16 }
 0x184   : > { %vm739_vm1 = vcmp.gt.s32.totalorder %v2307_v37, %v738_v43 }
 0x18d   : > { %v1693_v57 = vpop.eup %1692 }
 0x18e   : > { %v561_v58 = vmul.f32 %v1693_v57, %v556_v56 }
 0x190   : > { %v564_v59 = vsel %vm563_vm0, %v561_v58, 0.0  ;;  %v2313_v62 = vsel %vm563_vm0, %v561_v58, %v2260_v53  ;;  %v1304_v53 = vld [vmem:[%s2138_s19 + $0x20] sm:$0xff] }
 0x191   : > { %565 = vst [vmem:[%s2152_s18] sm:$0xff] %v564_v59  ;;  %638 = vmatmul.mubr.f32.vlgmr.msra.gmra.mrb[2].mxu0 %v2313_v62  ;;  %709 = vmatmul.mubr.f32.vlgmr.msra.gmra.mrb[2].mxu1 %v2313_v62 }
 0x192   : > { %1463 = vmatpush1.bf16.msra.mxu0 %v2165_v10  ;;  %1495 = vmatpush1.bf16.msra.mxu1 %v2175_v21 }
 0x193   : > { %1465 = vmatprep.subr.bf16.mxu0 %v2167_v11  ;;  %1497 = vmatprep.subr.bf16.mxu1 %v2181_v29 }
 0x194   : > { %814 = vmatprep.mubr.f32.mxu0 %v1932_v9  ;;  %885 = vmatprep.mubr.f32.mxu1 %v1932_v9 }
 0x196   : > { %1467 = vmatpush1.bf16.msra.mxu0 %v2171_v19  ;;  %1499 = vmatpush1.bf16.msra.mxu1 %v2184_v33 }
 0x197   : > { %1469 = vmatprep.subr.bf16.mxu0 %v2178_v25  ;;  %1501 = vmatprep.subr.bf16.mxu1 %v2193_v42 }
 0x19a   : > { %1471 = vmatpush1.bf16.msra.mxu0 %v2187_v35  ;;  %1503 = vmatpush1.bf16.msra.mxu1 %v2196_v47 }
 0x19b   : > { %1473 = vmatprep.subr.bf16.mxu0 %v2191_v39  ;;  %1505 = vmatprep.subr.bf16.mxu1 %v2202_v51 }
 0x19e   : > { %1475 = vmatpush1.bf16.msra.mxu0 %v2199_v49  ;;  %1507 = vmatpush1.bf16.msra.mxu1 %v2208_v60 }
 0x19f   : > { %1477 = vmatprep.subr.bf16.mxu0 %v2205_v54  ;;  %1509 = vmatprep.subr.bf16.mxu1 %v2214_v63 }
 0x1a2   : > { %1479 = vmatpush1.bf16.msra.mxu0 %v2211_v61  ;;  %1511 = vmatpush1.bf16.msra.mxu1 %v2220_v12 }
 0x1a3   : > { %1481 = vmatprep.subr.bf16.mxu0 %v2217_v2  ;;  %1513 = vmatprep.subr.bf16.mxu1 %v2226_v16 }
 0x1a6   : > { %1483 = vmatpush1.bf16.msra.mxu0 %v2223_v14  ;;  %1515 = vmatpush1.bf16.msra.mxu1 %v2235_v30 }
 0x1a7   : > { %1485 = vmatprep.subr.bf16.mxu0 %v2229_v22  ;;  %1517 = vmatprep.subr.bf16.mxu1 %v2241_v34 }
 0x1aa   : > { %1487 = vmatpush1.bf16.msra.mxu0 %v2238_v31  ;;  %1519 = vmatpush1.bf16.msra.mxu1 %v2247_v44 }
 0x1ab   : > { %1489 = vmatprep.subr.bf16.mxu0 %v2244_v38  ;;  %1521 = vmatprep.subr.bf16.mxu1 %v2253_v46 }
 0x1ae   : > { %1491 = vmatpush1.bf16.msra.mxu0 %v2250_v45  ;;  %1523 = vmatpush1.bf16.msra.mxu1 %v2257_v52 }
 0x1af   : > { %1525 = vmatprep.subr.bf16.mxu0 %v2161_v5  ;;  %1557 = vmatprep.subr.bf16.mxu1 %v2173_v20 }
 0x264   : > { %v639_v1 = vpop.f32.mrb[2].mxu0  ;;  %v710_v3 = vpop.f32.mrb[2].mxu1 }
 0x265   : > { %v715_v4 = vadd.f32 %v1304_v53, %v639_v1  ;;  %v641_v6 = vpop.f32.mrb[3].mxu0  ;;  %v712_v7 = vpop.f32.mrb[3].mxu1  ;;  %v717_v18 = vadd.f32 %v1306_v8, %v710_v3 }
 0x266   : > { %v716_v13 = vadd.f32 %v1305_v0, %v641_v6  ;;  %v718_v5 = vadd.f32 %v1307_v23, %v712_v7  ;;  %v1314_v6 = vld [vmem:[%s2138_s19 + $0x60] sm:$0xff]  ;;  %v1315_v7 = vld [vmem:[%s2138_s19 + $0x68] sm:$0xff]  ;;  %v1316_v23 = vld [vmem:[%s2138_s19 + $0x70] sm:$0xff] }
 0x267   : > { %v719_v15 = vmul.f32 0.5, %v715_v4 }
 0x268   : > { %v723_v17 = vmul.f32 0.5, %v716_v13  ;;  %v728_v24 = vmul.f32 0.5, %v718_v5 }
 0x269   : > { %1694 = vtanh.f32 %v719_v15 }
 0x26a   : > { %1696 = vtanh.f32 %v723_v17 }
 0x26b   : > { %1698 = vtanh.f32 %v717_v18 }
 0x26c   : > { %1700 = vtanh.f32 %v728_v24 }
 0x273   : > { %v1695_v20 = vpop.eup %1694 }
 0x274   : > { %v1697_v26 = vpop.eup %1696  ;;  %v721_v27 = vmul.f32 0.5, %v1695_v20 }
 0x275   : > { %v725_v28 = vmul.f32 0.5, %v1697_v26  ;;  %v1699_v36 = vpop.eup %1698 }
 0x276   : > { %v722_v32 = vadd.f32 0.5, %v721_v27  ;;  %v1701_v57 = vpop.eup %1700  ;;  %v1317_v27 = vld [vmem:[%s2138_s19 + $0x78] sm:$0xff] }
 0x277   : > { %v726_v40 = vadd.f32 0.5, %v725_v28  ;;  %v730_v58 = vmul.f32 0.5, %v1701_v57 }
 0x278   : > { %v733_v41 = vmul.f32 %v1699_v36, %v722_v32 }
 0x279   : > { %v732_v50 = vmul.f32 %v726_v40, %v2310_v48  ;;  %v731_v59 = vadd.f32 0.5, %v730_v58  ;;  %v1092_v58 = vstv %s1091_s22 }
 0x27a   : > { %vm1093_vm3 = vcmp.gt.s32.totalorder %v2307_v37, %v1092_v58 }
 0x27b   : > { %v734_v55 = vadd.f32 %v733_v41, %v732_v50 }
 0x27d   : > { %1702 = vtanh.f32 %v734_v55  ;;  %v2360_v56 = vsel %vm739_vm1, %v734_v55, %v2310_v48 }
 0x287   : > { %v1703_v53 = vpop.eup %1702 }
 0x288   : > { %v736_v0 = vmul.f32 %v1703_v53, %v731_v59 }
 0x28a   : > { %v740_v1 = vsel %vm739_vm1, %v736_v0, 0.0  ;;  %v2363_v3 = vsel %vm739_vm1, %v736_v0, %v2313_v62 }
 0x28b   : > { %1308 = vst [vmem:[%s2152_s18 + $0x8] sm:$0xff] %v740_v1  ;;  %815 = vmatmul.mubr.f32.vlgmr.msra.gmra.mrb[4].mxu0 %v2363_v3  ;;  %886 = vmatmul.mubr.f32.vlgmr.msra.gmra.mrb[4].mxu1 %v2363_v3 }
 0x28c   : > { %1527 = vmatpush1.bf16.msra.mxu0 %v2165_v10  ;;  %1559 = vmatpush1.bf16.msra.mxu1 %v2175_v21  ;;  %v1310_v10 = vld [vmem:[%s2138_s19 + $0x48] sm:$0xff] }
 0x28d   : > { %1529 = vmatprep.subr.bf16.mxu0 %v2167_v11  ;;  %1561 = vmatprep.subr.bf16.mxu1 %v2181_v29 }
 0x28e   : > { %991 = vmatprep.mubr.f32.mxu0 %v1932_v9  ;;  %1062 = vmatprep.mubr.f32.mxu1 %v1932_v9  ;;  %v1309_v9 = vld [vmem:[%s2138_s19 + $0x40] sm:$0xff] }
 0x290   : > { %1531 = vmatpush1.bf16.msra.mxu0 %v2171_v19  ;;  %1563 = vmatpush1.bf16.msra.mxu1 %v2184_v33  ;;  %v1311_v33 = vld [vmem:[%s2138_s19 + $0x50] sm:$0xff] }
 0x291   : > { %1533 = vmatprep.subr.bf16.mxu0 %v2178_v25  ;;  %1565 = vmatprep.subr.bf16.mxu1 %v2193_v42 }
 0x294   : > { %1535 = vmatpush1.bf16.msra.mxu0 %v2187_v35  ;;  %1567 = vmatpush1.bf16.msra.mxu1 %v2196_v47 }
 0x295   : > { %1537 = vmatprep.subr.bf16.mxu0 %v2191_v39  ;;  %1569 = vmatprep.subr.bf16.mxu1 %v2202_v51 }
 0x298   : > { %1539 = vmatpush1.bf16.msra.mxu0 %v2199_v49  ;;  %1571 = vmatpush1.bf16.msra.mxu1 %v2208_v60  ;;  %v1312_v49 = vld [vmem:[%s2138_s19 + $0x58] sm:$0xff] }
 0x299   : > { %1541 = vmatprep.subr.bf16.mxu0 %v2205_v54  ;;  %1573 = vmatprep.subr.bf16.mxu1 %v2214_v63 }
 0x29c   : > { %1543 = vmatpush1.bf16.msra.mxu0 %v2211_v61  ;;  %1575 = vmatpush1.bf16.msra.mxu1 %v2220_v12 }
 0x29d   : > { %1545 = vmatprep.subr.bf16.mxu0 %v2217_v2  ;;  %1577 = vmatprep.subr.bf16.mxu1 %v2226_v16 }
 0x2a0   : > { %1547 = vmatpush1.bf16.msra.mxu0 %v2223_v14  ;;  %1579 = vmatpush1.bf16.msra.mxu1 %v2235_v30  ;;  %v915_v30 = vstv %s914_s21 }
 0x2a1   : > { %1549 = vmatprep.subr.bf16.mxu0 %v2229_v22  ;;  %1581 = vmatprep.subr.bf16.mxu1 %v2241_v34  ;;  %vm916_vm2 = vcmp.gt.s32.totalorder %v2307_v37, %v915_v30 }
 0x2a4   : > { %1551 = vmatpush1.bf16.msra.mxu0 %v2238_v31  ;;  %1583 = vmatpush1.bf16.msra.mxu1 %v2247_v44 }
 0x2a5   : > { %1553 = vmatprep.subr.bf16.mxu0 %v2244_v38  ;;  %1585 = vmatprep.subr.bf16.mxu1 %v2253_v46 }
 0x2a8   : > { %1555 = vmatpush1.bf16.msra.mxu0 %v2250_v45  ;;  %1587 = vmatpush1.bf16.msra.mxu1 %v2257_v52 }
 0x35e   : > { %v816_v11 = vpop.f32.mrb[4].mxu0  ;;  %v887_v19 = vpop.f32.mrb[4].mxu1 }
 0x35f   : > { %v892_v21 = vadd.f32 %v1309_v9, %v816_v11  ;;  %v818_v25 = vpop.f32.mrb[5].mxu0  ;;  %v889_v29 = vpop.f32.mrb[5].mxu1  ;;  %v894_v47 = vadd.f32 %v1311_v33, %v887_v19 }
 0x360   : > { %v893_v35 = vadd.f32 %v1310_v10, %v818_v25  ;;  %v895_v51 = vadd.f32 %v1312_v49, %v889_v29 }
 0x361   : > { %v896_v39 = vmul.f32 0.5, %v892_v21 }
 0x362   : > { %v900_v42 = vmul.f32 0.5, %v893_v35  ;;  %v905_v54 = vmul.f32 0.5, %v895_v51 }
 0x363   : > { %1704 = vtanh.f32 %v896_v39 }
 0x364   : > { %1706 = vtanh.f32 %v900_v42 }
 0x365   : > { %1708 = vtanh.f32 %v894_v47 }
 0x366   : > { %1710 = vtanh.f32 %v905_v54 }
 0x36d   : > { %v1705_v60 = vpop.eup %1704 }
 0x36e   : > { %v1707_v61 = vpop.eup %1706  ;;  %v898_v63 = vmul.f32 0.5, %v1705_v60 }
 0x36f   : > { %v902_v2 = vmul.f32 0.5, %v1707_v61  ;;  %v1709_v14 = vpop.eup %1708 }
 0x370   : > { %v899_v12 = vadd.f32 0.5, %v898_v63  ;;  %v1711_v44 = vpop.eup %1710 }
 0x371   : > { %v903_v16 = vadd.f32 0.5, %v902_v2  ;;  %v907_v45 = vmul.f32 0.5, %v1711_v44 }
 0x372   : > { %v910_v22 = vmul.f32 %v1709_v14, %v899_v12 }
 0x373   : > { %v909_v31 = vmul.f32 %v903_v16, %v2360_v56  ;;  %v908_v46 = vadd.f32 0.5, %v907_v45 }
 0x375   : > { %v911_v34 = vadd.f32 %v910_v22, %v909_v31 }
 0x377   : > { %1712 = vtanh.f32 %v911_v34  ;;  %v921_v38 = vsel %vm916_vm2, %v911_v34, %v2360_v56 }
 0x381   : > { %v1713_v52 = vpop.eup %1712 }
 0x382   : > { %v913_v48 = vmul.f32 %v1713_v52, %v908_v46 }
 0x384   : > { %v917_v62 = vsel %vm916_vm2, %v913_v48, 0.0  ;;  %v920_v4 = vsel %vm916_vm2, %v913_v48, %v2363_v3 }
 0x385   : > { %1313 = vst [vmem:[%s2152_s18 + $0x10] sm:$0xff] %v917_v62  ;;  %992 = vmatmul.mubr.f32.vlgmr.msra.gmra.mrb[6].mxu0 %v920_v4  ;;  %1063 = vmatmul.mubr.f32.vlgmr.msra.gmra.mrb[6].mxu1 %v920_v4 }
 0x458   : > { %v993_v8 = vpop.f32.mrb[6].mxu0  ;;  %v1064_v13 = vpop.f32.mrb[6].mxu1 }
 0x459   : > { %v1069_v15 = vadd.f32 %v1314_v6, %v993_v8  ;;  %v995_v17 = vpop.f32.mrb[7].mxu0  ;;  %v1066_v18 = vpop.f32.mrb[7].mxu1  ;;  %v1071_v26 = vadd.f32 %v1316_v23, %v1064_v13 }
 0x45a   : > { %v1070_v5 = vadd.f32 %v1315_v7, %v995_v17  ;;  %v1072_v28 = vadd.f32 %v1317_v27, %v1066_v18 }
 0x45b   : > { %v1073_v24 = vmul.f32 0.5, %v1069_v15 }
 0x45c   : > { %v1077_v20 = vmul.f32 0.5, %v1070_v5  ;;  %v1082_v32 = vmul.f32 0.5, %v1072_v28 }
 0x45d   : > { %1714 = vtanh.f32 %v1073_v24 }
 0x45e   : > { %1716 = vtanh.f32 %v1077_v20 }
 0x45f   : > { %1718 = vtanh.f32 %v1071_v26 }
 0x460   : > { %1720 = vtanh.f32 %v1082_v32 }
 0x467   : > { %v1715_v36 = vpop.eup %1714 }
 0x468   : > { %v1717_v40 = vpop.eup %1716  ;;  %v1075_v41 = vmul.f32 0.5, %v1715_v36 }
 0x469   : > { %v1079_v43 = vmul.f32 0.5, %v1717_v40  ;;  %v1719_v55 = vpop.eup %1718 }
 0x46a   : > { %v1076_v50 = vadd.f32 0.5, %v1075_v41  ;;  %v1721_v1 = vpop.eup %1720 }
 0x46b   : > { %v1080_v56 = vadd.f32 0.5, %v1079_v43  ;;  %v1084_v3 = vmul.f32 0.5, %v1721_v1 }
 0x46c   : > { %v1087_v57 = vmul.f32 %v1719_v55, %v1076_v50 }
 0x46d   : > { %v1086_v59 = vmul.f32 %v1080_v56, %v921_v38  ;;  %v1085_v9 = vadd.f32 0.5, %v1084_v3 }
 0x46f   : > { %v1088_v53 = vadd.f32 %v1087_v57, %v1086_v59 }
 0x471   : > { %1722 = vtanh.f32 %v1088_v53  ;;  %v1098_v0 = vsel %vm1093_vm3, %v1088_v53, %v921_v38 }
 0x472   : > { %1100 = vst [vmem:[#allocation3] sm:$0xff] %v1098_v0 }
 0x47b   : > { %v1723_v10 = vpop.eup %1722 }
 0x47c   : > { %v1090_v11 = vmul.f32 %v1723_v10, %v1085_v9 }
 0x47e   : > { %v1094_v19 = vsel %vm1093_vm3, %v1090_v11, 0.0  ;;  %v1097_v21 = vsel %vm1093_vm3, %v1090_v11, %v920_v4 }
 0x47f   : > { %1318 = vst [vmem:[%s2152_s18 + $0x18] sm:$0xff] %v1094_v19  ;;  %1099 = vst [vmem:[#allocation2] sm:$0xff] %v1097_v21 }
 0x480 PF: > { %p1319_p12 = scmp.ne.s32.totalorder %s1916_s26, 2 }
 0x481   : > { %v1107_v29 = vld [vmem:[#allocation3] sm:$0xff] (!%p1319_p12) }
 0x482   : > { %1104 = sbr.rel (%p1319_p12) target bundleno = 1161 (0x489), region = 56  ;;  %1108 = vst [vmem:[#allocation14] sm:$0xff] (!%p1319_p12), %v1107_v29 }
 0x486   : > { %v1105_v25 = vld [vmem:[#allocation2] sm:$0xff] (!%p1319_p12) }
 0x487   : > { %1106 = vst [vmem:[#allocation12] sm:$0xff] (!%p1319_p12), %v1105_v25 }
 0x489 PF: > { %s1934_s17 = smov [#allocation12]   ;;  %s1331_s0 = sshll.u32 %s1916_s26, 9 }
 0x48a   : > { %s1140_s12 = sshll.u32 %s1934_s17, 4  ;;  %p2542_p0 = scmp.ne.s32.totalorder %s2528_s7, 0  ;;  %s1141_s12 = int_to_ptr.vmem [resolvable:$true] %s1140_s12 }
 0x48b   : > { %s1782_s19 = scalar_lea.vmem %s1141_s12, 128  ;;  %p1789_p1 = scmp.lt.s32.totalorder %s1141_s12, %s1141_s12 }
 0x48c   : > { %p1783_p10 = scmp.ne.s32.totalorder %s1141_s12, %s1782_s19  ;;  %p1790_p2 = scmp.lt.s32.totalorder %s1782_s19, %s1782_s19 }
 0x48e   : > { %p1784_p5 = pnand %p1783_p10, %p2542_p0  ;;  %p1791_p3 = por %p1790_p2, %p1789_p1 }
 0x490   : > { %p1785_p9 = pneg %p1784_p5 }
 0x492   : > { %p1792_p7 = pnand %p1791_p3, %p1785_p9 }
 0x494   : > { %1795 = shalt.err (!%p1792_p7)
}
 0x495   : > { %s1796_s15 = scalar_lea.hbm %s2518_s5, 128 }
 0x496   : > { %p1797_p13 = scmp.ne.s32.totalorder %s2518_s5, %s1796_s15  ;;  %p1802_p8 = scmp.lt.u32.totalorder %s1796_s15, %s2518_s5 }
 0x498   : > { %p1798_p4 = pnand %p1797_p13, %p2542_p0 }
 0x49a   : > { %p1799_p6 = pneg %p1798_p4 }
 0x49c   : > { %p1804_p12 = pnand %p1802_p8, %p1799_p6 }
 0x49e   : > { %1807 = shalt.err (!%p1804_p12)
}
 0x49f   : > { %1596 = dma.vmem_to_hbm [thread:$0]  (%p2542_p0), %s1141_s12, 128, %s2518_s5, [#allocation13]  }
 0x4a0   : > { %s2440_s10 = scalar_lea.hbm %s2517_s4, %s1331_s0  ;;  %s1124_s29 = sshll.u32 %s2152_s18, 4  ;;  %s2443_s29 = int_to_ptr.vmem [resolvable:$true] %s1124_s29 }
 0x4a1   : > { %s1110_s15 = scalar_lea.sflag [#allocation8], %s2134_s11  ;;  %s1808_s30 = scalar_lea.vmem %s2443_s29, 512 }
 0x4a2   : > { %p1809_p10 = scmp.ne.s32.totalorder %s2443_s29, %s1808_s30  ;;  %s1935_s8 = smov [#allocation11]  }
 0x4a3   : > { %s1812_s26 = sshll.u32 %s1935_s8, 4  ;;  %s1813_s26 = int_to_ptr.vmem [resolvable:$false] %s1812_s26 }
 0x4a4   : > { %p1810_p5 = pnand %p1809_p10, %p2075_p11  ;;  %s1814_s12 = scalar_lea.vmem %s1813_s26, 1024 }
 0x4a5   : > { %p1815_p1 = scmp.lt.s32.totalorder %s2443_s29, %s1813_s26  ;;  %p1816_p2 = scmp.lt.s32.totalorder %s1814_s12, %s1808_s30 }
 0x4a6   : > { %p1811_p9 = pneg %p1810_p5 }
 0x4a7   : > { %p1817_p3 = por %p1816_p2, %p1815_p1 }
 0x4a9   : > { %p1818_p7 = pnand %p1817_p3, %p1811_p9 }
 0x4ab   : > { %1821 = shalt.err (!%p1818_p7)
}
 0x4ac   : > { %s1822_s18 = scalar_lea.hbm %s2440_s10, 512  ;;  %s1826_s21 = scalar_lea.hbm %s2517_s4, 1536 }
 0x4ad   : > { %p1823_p13 = scmp.ne.s32.totalorder %s2440_s10, %s1822_s18  ;;  %p1827_p8 = scmp.lt.u32.totalorder %s2440_s10, %s2517_s4 }
 0x4ae   : > { %p1828_p12 = scmp.lt.u32.totalorder %s1826_s21, %s1822_s18  ;;  %p1830_p5 = scmp.lt.u32.totalorder %s1822_s18, %s2440_s10 }
 0x4af   : > { %p1824_p4 = pnand %p1823_p13, %p2075_p11 }
 0x4b0   : > { %p1829_p10 = por %p1828_p12, %p1827_p8 }
 0x4b1   : > { %p1825_p6 = pneg %p1824_p4 }
 0x4b2   : > { %p1831_p9 = por %p1830_p5, %p1829_p10 }
 0x4b4   : > { %p1832_p1 = pnand %p1831_p9, %p1825_p6 }
 0x4b6   : > { %1835 = shalt.err (!%p1832_p1)
}
 0x4b7   : > { %s1936_s19 = smov 128   ;;  %s1937_s30 = smov 8  }
 0x4b8   : > { %1594 = dma.vmem_to_hbm [thread:$0]  (%p2075_p11), %s2443_s29, 512, %s2440_s10, %s1110_s15, %s1936_s19, %s1936_s19, %s1937_s30  }
 0x4b9   : > { %s1938_s8 = smov [#allocation14]  }
 0x4ba   : > { %s1153_s26 = sshll.u32 %s1938_s8, 4  ;;  %s1154_s26 = int_to_ptr.vmem [resolvable:$true] %s1153_s26 }
 0x4bb   : > { %s1836_s12 = scalar_lea.vmem %s1154_s26, 128  ;;  %p1843_p13 = scmp.lt.s32.totalorder %s1154_s26, %s1154_s26 }
 0x4bc   : > { %p1837_p2 = scmp.ne.s32.totalorder %s1154_s26, %s1836_s12  ;;  %p1844_p4 = scmp.lt.s32.totalorder %s1836_s12, %s1836_s12 }
 0x4be   : > { %p1838_p3 = pnand %p1837_p2, %p2542_p0  ;;  %p1845_p6 = por %p1844_p4, %p1843_p13 }
 0x4c0   : > { %p1839_p7 = pneg %p1838_p3 }
 0x4c2   : > { %p1846_p8 = pnand %p1845_p6, %p1839_p7 }
 0x4c4   : > { %1849 = shalt.err (!%p1846_p8)
}
 0x4c5   : > { %s1850_s13 = scalar_lea.hbm %s2519_s6, 128 }
 0x4c6   : > { %p1851_p11 = scmp.ne.s32.totalorder %s2519_s6, %s1850_s13  ;;  %p1856_p5 = scmp.lt.u32.totalorder %s1850_s13, %s2519_s6 }
 0x4c8   : > { %p1852_p12 = pnand %p1851_p11, %p2542_p0 }
 0x4ca   : > { %p1853_p10 = pneg %p1852_p12 }
 0x4cc   : > { %p1858_p9 = pnand %p1856_p5, %p1853_p10 }
 0x4ce   : > { %1861 = shalt.err (!%p1858_p9)
}
 0x4cf   : > { %1598 = dma.vmem_to_hbm [thread:$0]  (%p2542_p0), %s1154_s26, 128, %s2519_s6, [#allocation13]  }
 0x4d0   : > { %1895 = dma.done.wait (%p2542_p0), [#allocation13], 256  }
 0x4d1   : > { %1897 = vsyncadd (%p2542_p0), [#allocation13], 4294967040 }
 0x4d2 PF: > { %p1623_p1 = scmp.ge.s32.totalorder %s1924_s28, 2  ;;  %s1173_s22 = sand.u32 1, %s1904_s23  }
 0x4d3   : > { %p2543_p2 = scmp.ne.s32.totalorder %s2530_s9, 0  ;;  %s1174_s17 = scalar_lea.sflag [#allocation8], %s1173_s22 }
 0x4d5   : > { %p1613_p3 = pnand %p1623_p1, %p2543_p2 }
 0x4d7   : > { %1899 = dma.done.wait (!%p1613_p3), %s1174_s17, 512  }
 0x4d8   : > { %1901 = vsyncadd (!%p1613_p3), %s1174_s17, 4294966784  ;;  %s26_s28 = sadd.s32 1, %s1924_s28   ;;  %s2544_s23 = smov %s1908_s24 }
 0x4d9   : > { %p23_p7 = scmp.ge.s32.totalorder %s26_s28, 5   ;;  %s2545_s24 = smov %s1912_s25 }
 0x4da   : > { %s2546_s25 = smov %s2084_s20  ;;  %s2547_s26 = smov %s1920_s27 }
 0x4db   : > { %s2548_s27 = smov %s2550_s14  ;;  %25 = sbr.rel (!%p23_p7) target bundleno = 10 (0xa), region = 124 }
 0x4e2   :  { %1179 = vsyncpa [#allocation7], 1 }
 0x4e3   :  { %1181 = vsyncpa [#allocation7 + $0x1], 1 }
 0x4e4   :  { %1182 = vsyncpa [#allocation10], 1 }
 0x4e5   :  { %1183 = vsyncpa [#allocation8], 1 }
 0x4e6   :  { %1185 = vsyncpa [#allocation8 + $0x1], 1 }
 0x4e7   :  { %1186 = vsyncpa [#allocation13], 1 }

</bundles_post_ra>
